<compile_context>
chip_gen: v7x
topology: tpu7x:2x2x1
jax: 0.10.0
libtpu: 0.0.40
codegen_flags: <defaults>
</compile_context>

<pallas_src>
import functools

import jax
import jax.numpy as jnp
from jax import lax
from jax.experimental import pallas as pl
from jax.experimental.pallas import tpu as pltpu

_BN_EPS = 1e-5


# ----------------------------- in-kernel helpers ---------------------------- #

def _elu(x):
    # ELU(alpha=1).  Forward-only; the unselected exp branch is fine here.
    # TODO(synk): a custom VJP would be needed for NaN-safe gradients.
    return jnp.where(x > 0, x, jnp.exp(x) - 1.0)


def _bn_scale_shift(stats_ref, gb_ref, count):
    # Fused BatchNorm finalization from per-image partial sums (training-mode
    # batch statistics, biased variance, eps=1e-5):  BN(x) = x * scale + shift.
    #   stats_ref: (N, 2, C) block  (row 0: sum, row 1: sum of squares, per image)
    #   gb_ref:    (2, C)   block  (row 0: gamma, row 1: beta)
    s = jnp.sum(stats_ref[...], axis=0)                       # (2, C)
    inv_n = 1.0 / count
    mean = s[0:1, :] * inv_n
    var = jnp.maximum(s[1:2, :] * inv_n - mean * mean, 0.0)   # biased variance
    scale = gb_ref[0:1, :] * lax.rsqrt(var + _BN_EPS)         # EUP rsqrt
    shift = gb_ref[1:2, :] - mean * scale
    return scale, shift


def _stats_block(out):
    # (2, C): per-image sum and sum-of-squares of the raw conv output.
    return jnp.concatenate([jnp.sum(out, axis=0, keepdims=True),
                            jnp.sum(out * out, axis=0, keepdims=True)], axis=0)


# ------------------------------- Pallas kernels ----------------------------- #

def _down_conv_kernel(p00_ref, p01_ref, p10_ref, p11_ref, w_ref, b_ref,
                      out_ref, stats_ref, *, Ho, Wo, Cin, Cout):
    # Stride-2 3x3 conv on one image.  p{r}{c} are the (even/odd row, even/odd col)
    # phase planes of the zero-padded input, so each tap is a unit-stride slice.
    # The 9 taps are folded into K: one (Ho*Wo, 9*Cin) x (9*Cin, Cout) bf16 MXU dot.
    planes = (p00_ref, p01_ref, p10_ref, p11_ref)
    taps = []
    for kh in range(3):
        for kw in range(3):
            pref = planes[(kh % 2) * 2 + (kw % 2)]
            taps.append(pref[0, kh // 2:kh // 2 + Ho, kw // 2:kw // 2 + Wo, :])
    patch = jnp.concatenate(taps, axis=-1)                    # (Ho, Wo, 9*Cin) f32
    patch = patch.reshape(Ho * Wo, 9 * Cin).astype(jnp.bfloat16)
    out = jnp.dot(patch, w_ref[...],
                  preferred_element_type=jnp.float32) + b_ref[...]
    out_ref[0] = out
    stats_ref[0] = _stats_block(out)


def _layer_conv_kernel(x_ref, pstats_ref, gb_ref, w_ref, b_ref,
                       out_ref, stats_ref, pad_ref, *, Ho, Wo, C, dil, count):
    # One fused block per image:
    #   scale/shift = finalize(previous-layer BN stats)      (fused, no XLA glue)
    #   a   = ELU(x_raw * scale + shift)                      (VPU + EUP, f32)
    #   y   = dilated 3x3 conv(zero_pad(a)) + bias            (one bf16 MXU dot)
    #   stats = per-image sum / sumsq of y                    (for this layer's BN)
    scale, shift = _bn_scale_shift(pstats_ref, gb_ref, count)
    a = _elu(x_ref[0] * scale + shift)                        # (Ho*Wo, C) f32

    # Zero-padded activation lives in a VMEM scratch (no concat copies).
    pad_ref[...] = jnp.zeros((Ho + 2 * dil, Wo + 2 * dil, C), jnp.float32)
    pad_ref[dil:dil + Ho, dil:dil + Wo, :] = a.reshape(Ho, Wo, C)

    taps = [pad_ref[kh * dil:kh * dil + Ho, kw * dil:kw * dil + Wo, :]
            for kh in range(3) for kw in range(3)]
    patch = jnp.concatenate(taps, axis=-1)                    # (Ho, Wo, 9*C) f32
    patch = patch.reshape(Ho * Wo, 9 * C).astype(jnp.bfloat16)
    out = jnp.dot(patch, w_ref[...],
                  preferred_element_type=jnp.float32) + b_ref[...]
    out_ref[0] = out
    stats_ref[0] = _stats_block(out)


def _residual_bn_elu_kernel(a_ref, h_ref, pstats_ref, gb_ref, o_ref, *, count):
    # out = ELU(out1_raw + BN(h_raw)).  Matches the reference forward, where out1
    # is the raw (pre-BN) down-conv output and BN is the last layer's BatchNorm.
    scale, shift = _bn_scale_shift(pstats_ref, gb_ref, count)
    o_ref[0] = _elu(a_ref[0] + h_ref[0] * scale + shift)


# --------------------------------- wrappers --------------------------------- #

_CPARAMS = pltpu.CompilerParams(dimension_semantics=("parallel",),
                                vmem_limit_bytes=32 * 1024 * 1024)


def down_conv(x, w, b):
    # x: (N, H, W, Cin); w: (3, 3, Cin, Cout); b: (Cout,)
    N, H, W, Cin = x.shape
    Cout = w.shape[-1]
    Ho = (H + 2 - 3) // 2 + 1
    Wo = (W + 2 - 3) // 2 + 1

    xp = jnp.pad(x, ((0, 0), (1, 1), (1, 1), (0, 0)))
    # even/odd phase planes of the padded input (cheap XLA slicing, no 9x blowup)
    planes = [xp[:, p::2, q::2, :] for p in (0, 1) for q in (0, 1)]
    w2 = w.reshape(9 * Cin, Cout).astype(jnp.bfloat16)        # (kh,kw,cin)-major
    b2 = b.reshape(1, Cout).astype(jnp.float32)

    kernel = functools.partial(_down_conv_kernel, Ho=Ho, Wo=Wo, Cin=Cin, Cout=Cout)
    flops = 2 * N * Ho * Wo * 9 * Cin * Cout
    bytes_acc = 4 * (xp.size + N * Ho * Wo * Cout) + 2 * 9 * Cin * Cout

    out, stats = pl.pallas_call(
        kernel,
        grid=(N,),
        in_specs=[pl.BlockSpec((1,) + p.shape[1:], lambda n: (n, 0, 0, 0))
                  for p in planes]
                 + [pl.BlockSpec((9 * Cin, Cout), lambda n: (0, 0)),
                    pl.BlockSpec((1, Cout), lambda n: (0, 0))],
        out_specs=[pl.BlockSpec((1, Ho * Wo, Cout), lambda n: (n, 0, 0)),
                   pl.BlockSpec((1, 2, Cout), lambda n: (n, 0, 0))],
        out_shape=(jax.ShapeDtypeStruct((N, Ho * Wo, Cout), jnp.float32),
                   jax.ShapeDtypeStruct((N, 2, Cout), jnp.float32)),
        compiler_params=_CPARAMS,
        cost_estimate=pl.CostEstimate(flops=flops, transcendentals=0,
                                      bytes_accessed=bytes_acc),
    )(*planes, w2, b2)
    return out, stats, (N, Ho, Wo, Cout)


def layer_conv(h_raw, prev_stats, prev_gamma, prev_beta, w, b, dil, dims):
    # One fused [BN-finalize+apply, ELU, dilated conv + bias, BN-stats] block.
    N, Ho, Wo, C = dims
    count = float(N * Ho * Wo)
    w2 = w.reshape(9 * C, C).astype(jnp.bfloat16)
    b2 = b.reshape(1, C).astype(jnp.float32)
    gb = jnp.stack([prev_gamma, prev_beta]).astype(jnp.float32)   # (2, C)

    kernel = functools.partial(_layer_conv_kernel, Ho=Ho, Wo=Wo, C=C,
                               dil=dil, count=count)
    flops = 2 * N * Ho * Wo * 9 * C * C
    bytes_acc = 4 * (2 * N * Ho * Wo * C) + 2 * 9 * C * C

    out, stats = pl.pallas_call(
        kernel,
        grid=(N,),
        in_specs=[pl.BlockSpec((1, Ho * Wo, C), lambda n: (n, 0, 0)),
                  pl.BlockSpec((N, 2, C), lambda n: (0, 0, 0)),
                  pl.BlockSpec((2, C), lambda n: (0, 0)),
                  pl.BlockSpec((9 * C, C), lambda n: (0, 0)),
                  pl.BlockSpec((1, C), lambda n: (0, 0))],
        out_specs=[pl.BlockSpec((1, Ho * Wo, C), lambda n: (n, 0, 0)),
                   pl.BlockSpec((1, 2, C), lambda n: (n, 0, 0))],
        out_shape=(jax.ShapeDtypeStruct((N, Ho * Wo, C), jnp.float32),
                   jax.ShapeDtypeStruct((N, 2, C), jnp.float32)),
        scratch_shapes=[pltpu.VMEM((Ho + 2 * dil, Wo + 2 * dil, C), jnp.float32)],
        compiler_params=_CPARAMS,
        cost_estimate=pl.CostEstimate(flops=flops,
                                      transcendentals=N * Ho * Wo * C,
                                      bytes_accessed=bytes_acc),
    )(h_raw, prev_stats, gb, w2, b2)
    return out, stats


def residual_bn_elu(out1_raw, h_raw, stats, gamma, beta, dims):
    # out = ELU(out1_raw + BN(h_raw)); BN finalization fused in-kernel.
    N, Ho, Wo, C = dims
    count = float(N * Ho * Wo)
    gb = jnp.stack([gamma, beta]).astype(jnp.float32)

    kernel = functools.partial(_residual_bn_elu_kernel, count=count)
    out = pl.pallas_call(
        kernel,
        grid=(N,),
        in_specs=[pl.BlockSpec((1, Ho * Wo, C), lambda n: (n, 0, 0)),
                  pl.BlockSpec((1, Ho * Wo, C), lambda n: (n, 0, 0)),
                  pl.BlockSpec((N, 2, C), lambda n: (0, 0, 0)),
                  pl.BlockSpec((2, C), lambda n: (0, 0))],
        out_specs=pl.BlockSpec((1, Ho * Wo, C), lambda n: (n, 0, 0)),
        out_shape=jax.ShapeDtypeStruct((N, Ho * Wo, C), jnp.float32),
        compiler_params=_CPARAMS,
    )(out1_raw, h_raw, stats, gb)
    return out.reshape(N, Ho, Wo, C)


# ------------------------- DownTransition parameters ------------------------ #

def init_params(key, inchan, outchan, layer):
    # NOTE: weight layout is (KH, KW, Cin, Cout); PyTorch weights ((Cout,Cin,KH,KW))
    # would need a transpose before being dropped in here.
    keys = jax.random.split(key, 2 + 2 * layer)
    params = {
        "down_w": jax.random.normal(keys[0], (3, 3, inchan, outchan),
                                    jnp.float32) / jnp.sqrt(9.0 * inchan),
        "down_b": jax.random.normal(keys[1], (outchan,), jnp.float32) * 0.01,
        "bn_gamma": jnp.ones((outchan,), jnp.float32),
        "bn_beta": jnp.zeros((outchan,), jnp.float32),
        "layers": [],
    }
    for i in range(layer):
        w = jax.random.normal(keys[2 + 2 * i], (3, 3, outchan, outchan),
                              jnp.float32) / jnp.sqrt(9.0 * outchan)
        b = jax.random.normal(keys[3 + 2 * i], (outchan,), jnp.float32) * 0.01
        params["layers"].append({
            "w": w, "b": b,
            "gamma": jnp.ones((outchan,), jnp.float32),
            "beta": jnp.zeros((outchan,), jnp.float32),
        })
    return params


def down_transition_forward(params, x, dilation_=1):
    # out1 = self.down(x): Conv k3, pad 1, stride 2 (raw, pre-BN) + its BN stats.
    out1_raw, stats, dims = down_conv(x, params["down_w"], params["down_b"])
    gamma, beta = params["bn_gamma"], params["bn_beta"]

    # self.conv(self.bn(out1)): each [lazy-BN, ELU, dilated Conv, BN-stats] block is
    # one fused pallas_call; the pending BN (stats, gamma, beta) is applied by the
    # NEXT consumer kernel, so no XLA math sits between kernels.
    h_raw = out1_raw
    for lp in params["layers"]:
        h_raw, stats_new = layer_conv(h_raw, stats, gamma, beta,
                                      lp["w"], lp["b"], dilation_, dims)
        stats, gamma, beta = stats_new, lp["gamma"], lp["beta"]

    # out2 = ELU(out1 + BN(h))   (out1 is the raw pre-BN down-conv output, as in
    # the reference forward: relu(add(out1, conv(bn(out1)))) )
    return residual_bn_elu(out1_raw, h_raw, stats, gamma, beta, dims)


# ------------------------------------ main ---------------------------------- #

if __name__ == "__main__":
    key = jax.random.PRNGKey(0)
    kx, kp = jax.random.split(key)

    inchan, outchan, layer, dilation_ = 4, 8, 2, 2
    N, H, W = 2, 16, 16

    x = jax.random.normal(kx, (N, H, W, inchan), jnp.float32)   # NHWC
    params = init_params(kp, inchan, outchan, layer)

    fwd = jax.jit(functools.partial(down_transition_forward, dilation_=dilation_))
    out = fwd(params, x)
    jax.block_until_ready(out)
    assert out.shape == (N, H // 2, W // 2, outchan)
    print("KERNEL_OK")
</pallas_src>

<mosaic_0001>
module attributes {stable_mosaic.version = 11 : i64} {
  func.func @_residual_bn_elu_kernel(%arg0: i32, %arg1: memref<1x64x8xf32, #tpu.memory_space<vmem>>, %arg2: memref<1x64x8xf32, #tpu.memory_space<vmem>>, %arg3: memref<2x2x8xf32, #tpu.memory_space<vmem>>, %arg4: memref<2x8xf32, #tpu.memory_space<vmem>>, %arg5: memref<1x64x8xf32, #tpu.memory_space<vmem>>) attributes {dimension_semantics = [#tpu.dimension_semantics<parallel>], iteration_bounds = array<i64: 2>, scalar_prefetch = 0 : i64, scratch_operands = 0 : i64, tpu.core_type = #tpu.core_type<tc>, window_params = [{transform_indices = @transform_0, window_bounds = array<i64: 1, 64, 8>}, {transform_indices = @transform_1, window_bounds = array<i64: 1, 64, 8>}, {pipeline_mode = #tpu.pipeline_mode<synchronous>, transform_indices = @transform_2, window_bounds = array<i64: 2, 2, 8>}, {pipeline_mode = #tpu.pipeline_mode<synchronous>, transform_indices = @transform_3, window_bounds = array<i64: 2, 8>}, {transform_indices = @transform_4, window_bounds = array<i64: 1, 64, 8>}]} {
    %c0 = arith.constant 0 : index
    %c0_0 = arith.constant 0 : index
    %c0_1 = arith.constant 0 : index
    %0 = vector.load %arg3[%c0, %c0_0, %c0_1] : memref<2x2x8xf32, #tpu.memory_space<vmem>>, vector<2x2x8xf32>
    %cst = arith.constant dense<0.000000e+00> : vector<2x8xf32>
    %1 = vector.multi_reduction <add>, %0, %cst [0] : vector<2x2x8xf32> to vector<2x8xf32>
    %2 = vector.extract_strided_slice %1 {offsets = [0, 0], sizes = [1, 8], strides = [1, 1]} : vector<2x8xf32> to vector<1x8xf32>
    %cst_2 = arith.constant 7.812500e-03 : f32
    %3 = vector.broadcast %cst_2 : f32 to vector<1x8xf32>
    %4 = arith.mulf %2, %3 : vector<1x8xf32>
    %5 = vector.extract_strided_slice %1 {offsets = [1, 0], sizes = [1, 8], strides = [1, 1]} : vector<2x8xf32> to vector<1x8xf32>
    %cst_3 = arith.constant 7.812500e-03 : f32
    %6 = vector.broadcast %cst_3 : f32 to vector<1x8xf32>
    %7 = arith.mulf %5, %6 : vector<1x8xf32>
    %8 = arith.mulf %4, %4 : vector<1x8xf32>
    %9 = arith.subf %7, %8 : vector<1x8xf32>
    %cst_4 = arith.constant 0.000000e+00 : f32
    %10 = vector.broadcast %cst_4 : f32 to vector<1x8xf32>
    %11 = arith.maximumf %9, %10 : vector<1x8xf32>
    %c0_5 = arith.constant 0 : index
    %c0_6 = arith.constant 0 : index
    %12 = vector.load %arg4[%c0_5, %c0_6] : memref<2x8xf32, #tpu.memory_space<vmem>>, vector<1x8xf32>
    %cst_7 = arith.constant 9.99999974E-6 : f32
    %13 = vector.broadcast %cst_7 : f32 to vector<1x8xf32>
    %14 = arith.addf %11, %13 : vector<1x8xf32>
    %15 = math.rsqrt %14 : vector<1x8xf32>
    %16 = arith.mulf %12, %15 : vector<1x8xf32>
    %c1 = arith.constant 1 : index
    %c0_8 = arith.constant 0 : index
    %17 = vector.load %arg4[%c1, %c0_8] : memref<2x8xf32, #tpu.memory_space<vmem>>, vector<1x8xf32>
    %18 = arith.mulf %4, %16 : vector<1x8xf32>
    %19 = arith.subf %17, %18 : vector<1x8xf32>
    %c0_9 = arith.constant 0 : index
    %c0_10 = arith.constant 0 : index
    %c0_11 = arith.constant 0 : index
    %20 = vector.load %arg1[%c0_9, %c0_10, %c0_11] : memref<1x64x8xf32, #tpu.memory_space<vmem>>, vector<1x64x8xf32>
    %21 = vector.shape_cast %20 : vector<1x64x8xf32> to vector<64x8xf32>
    %c0_12 = arith.constant 0 : index
    %c0_13 = arith.constant 0 : index
    %c0_14 = arith.constant 0 : index
    %22 = vector.load %arg2[%c0_12, %c0_13, %c0_14] : memref<1x64x8xf32, #tpu.memory_space<vmem>>, vector<1x64x8xf32>
    %23 = vector.shape_cast %22 : vector<1x64x8xf32> to vector<64x8xf32>
    %24 = vector.broadcast %16 : vector<1x8xf32> to vector<64x8xf32>
    %25 = arith.mulf %23, %24 : vector<64x8xf32>
    %26 = arith.addf %21, %25 : vector<64x8xf32>
    %27 = vector.broadcast %19 : vector<1x8xf32> to vector<64x8xf32>
    %28 = arith.addf %26, %27 : vector<64x8xf32>
    %cst_15 = arith.constant 0.000000e+00 : f32
    %29 = vector.broadcast %cst_15 : f32 to vector<64x8xf32>
    %30 = arith.cmpf ogt, %28, %29 : vector<64x8xf32>
    %31 = math.exp %28 : vector<64x8xf32>
    %cst_16 = arith.constant 1.000000e+00 : f32
    %32 = vector.broadcast %cst_16 : f32 to vector<64x8xf32>
    %33 = arith.subf %31, %32 : vector<64x8xf32>
    %34 = arith.select %30, %28, %33 : vector<64x8xi1>, vector<64x8xf32>
    %c0_17 = arith.constant 0 : index
    %c0_18 = arith.constant 0 : index
    %c0_19 = arith.constant 0 : index
    %35 = vector.load %arg5[%c0_17, %c0_18, %c0_19] : memref<1x64x8xf32, #tpu.memory_space<vmem>>, vector<1x64x8xf32>
    %36 = vector.shape_cast %35 : vector<1x64x8xf32> to vector<64x8xf32>
    %37 = vector.shape_cast %34 : vector<64x8xf32> to vector<1x64x8xf32>
    tpu.vector_store %arg5[%c0_17, %c0_18, %c0_19], %37 {strides = array<i32>} : memref<1x64x8xf32, #tpu.memory_space<vmem>>, vector<1x64x8xf32>,
    return
  }
  func.func @transform_0(%arg0: i32) -> (i32, i32, i32) {
    %c0_i32 = arith.constant 0 : i32
    %c0_i32_0 = arith.constant 0 : i32
    %c0_i32_1 = arith.constant 0 : i32
    return %arg0, %c0_i32, %c0_i32_0 : i32, i32, i32
  }
  func.func @transform_1(%arg0: i32) -> (i32, i32, i32) {
    %c0_i32 = arith.constant 0 : i32
    %c0_i32_0 = arith.constant 0 : i32
    %c0_i32_1 = arith.constant 0 : i32
    return %arg0, %c0_i32, %c0_i32_0 : i32, i32, i32
  }
  func.func @transform_2(%arg0: i32) -> (i32, i32, i32) {
    %c0_i32 = arith.constant 0 : i32
    %c0_i32_0 = arith.constant 0 : i32
    %c0_i32_1 = arith.constant 0 : i32
    %c0_i32_2 = arith.constant 0 : i32
    return %c0_i32, %c0_i32_0, %c0_i32_1 : i32, i32, i32
  }
  func.func @transform_3(%arg0: i32) -> (i32, i32) {
    %c0_i32 = arith.constant 0 : i32
    %c0_i32_0 = arith.constant 0 : i32
    %c0_i32_1 = arith.constant 0 : i32
    return %c0_i32, %c0_i32_0 : i32, i32
  }
  func.func @transform_4(%arg0: i32) -> (i32, i32, i32) {
    %c0_i32 = arith.constant 0 : i32
    %c0_i32_0 = arith.constant 0 : i32
    %c0_i32_1 = arith.constant 0 : i32
    return %arg0, %c0_i32, %c0_i32_0 : i32, i32, i32
  }
}

module attributes {stable_mosaic.version = 11 : i64} {
  func.func @_down_conv_kernel(%arg0: i32, %arg1: memref<1x9x9x4xf32, #tpu.memory_space<vmem>>, %arg2: memref<1x9x9x4xf32, #tpu.memory_space<vmem>>, %arg3: memref<1x9x9x4xf32, #tpu.memory_space<vmem>>, %arg4: memref<1x9x9x4xf32, #tpu.memory_space<vmem>>, %arg5: memref<36x8xbf16, #tpu.memory_space<vmem>>, %arg6: memref<1x8xf32, #tpu.memory_space<vmem>>, %arg7: memref<1x64x8xf32, #tpu.memory_space<vmem>>, %arg8: memref<1x2x8xf32, #tpu.memory_space<vmem>>) attributes {dimension_semantics = [#tpu.dimension_semantics<parallel>], iteration_bounds = array<i64: 2>, scalar_prefetch = 0 : i64, scratch_operands = 0 : i64, tpu.core_type = #tpu.core_type<tc>, window_params = [{transform_indices = @transform_0, window_bounds = array<i64: 1, 9, 9, 4>}, {transform_indices = @transform_1, window_bounds = array<i64: 1, 9, 9, 4>}, {transform_indices = @transform_2, window_bounds = array<i64: 1, 9, 9, 4>}, {transform_indices = @transform_3, window_bounds = array<i64: 1, 9, 9, 4>}, {pipeline_mode = #tpu.pipeline_mode<synchronous>, transform_indices = @transform_4, window_bounds = array<i64: 36, 8>}, {pipeline_mode = #tpu.pipeline_mode<synchronous>, transform_indices = @transform_5, window_bounds = array<i64: 1, 8>}, {transform_indices = @transform_6, window_bounds = array<i64: 1, 64, 8>}, {transform_indices = @transform_7, window_bounds = array<i64: 1, 2, 8>}]} {
    %c0 = arith.constant 0 : index
    %c0_0 = arith.constant 0 : index
    %c0_1 = arith.constant 0 : index
    %c0_2 = arith.constant 0 : index
    %0 = vector.load %arg1[%c0, %c0_0, %c0_1, %c0_2] : memref<1x9x9x4xf32, #tpu.memory_space<vmem>>, vector<1x8x8x4xf32>
    %1 = vector.shape_cast %0 : vector<1x8x8x4xf32> to vector<8x8x4xf32>
    %c0_3 = arith.constant 0 : index
    %c0_4 = arith.constant 0 : index
    %c0_5 = arith.constant 0 : index
    %c0_6 = arith.constant 0 : index
    %2 = vector.load %arg2[%c0_3, %c0_4, %c0_5, %c0_6] : memref<1x9x9x4xf32, #tpu.memory_space<vmem>>, vector<1x8x8x4xf32>
    %3 = vector.shape_cast %2 : vector<1x8x8x4xf32> to vector<8x8x4xf32>
    %c0_7 = arith.constant 0 : index
    %c0_8 = arith.constant 0 : index
    %c1 = arith.constant 1 : index
    %c0_9 = arith.constant 0 : index
    %4 = vector.load %arg1[%c0_7, %c0_8, %c1, %c0_9] : memref<1x9x9x4xf32, #tpu.memory_space<vmem>>, vector<1x8x8x4xf32>
    %5 = vector.shape_cast %4 : vector<1x8x8x4xf32> to vector<8x8x4xf32>
    %c0_10 = arith.constant 0 : index
    %c0_11 = arith.constant 0 : index
    %c0_12 = arith.constant 0 : index
    %c0_13 = arith.constant 0 : index
    %6 = vector.load %arg3[%c0_10, %c0_11, %c0_12, %c0_13] : memref<1x9x9x4xf32, #tpu.memory_space<vmem>>, vector<1x8x8x4xf32>
    %7 = vector.shape_cast %6 : vector<1x8x8x4xf32> to vector<8x8x4xf32>
    %c0_14 = arith.constant 0 : index
    %c0_15 = arith.constant 0 : index
    %c0_16 = arith.constant 0 : index
    %c0_17 = arith.constant 0 : index
    %8 = vector.load %arg4[%c0_14, %c0_15, %c0_16, %c0_17] : memref<1x9x9x4xf32, #tpu.memory_space<vmem>>, vector<1x8x8x4xf32>
    %9 = vector.shape_cast %8 : vector<1x8x8x4xf32> to vector<8x8x4xf32>
    %c0_18 = arith.constant 0 : index
    %c0_19 = arith.constant 0 : index
    %c1_20 = arith.constant 1 : index
    %c0_21 = arith.constant 0 : index
    %10 = vector.load %arg3[%c0_18, %c0_19, %c1_20, %c0_21] : memref<1x9x9x4xf32, #tpu.memory_space<vmem>>, vector<1x8x8x4xf32>
    %11 = vector.shape_cast %10 : vector<1x8x8x4xf32> to vector<8x8x4xf32>
    %c0_22 = arith.constant 0 : index
    %c1_23 = arith.constant 1 : index
    %c0_24 = arith.constant 0 : index
    %c0_25 = arith.constant 0 : index
    %12 = vector.load %arg1[%c0_22, %c1_23, %c0_24, %c0_25] : memref<1x9x9x4xf32, #tpu.memory_space<vmem>>, vector<1x8x8x4xf32>
    %13 = vector.shape_cast %12 : vector<1x8x8x4xf32> to vector<8x8x4xf32>
    %c0_26 = arith.constant 0 : index
    %c1_27 = arith.constant 1 : index
    %c0_28 = arith.constant 0 : index
    %c0_29 = arith.constant 0 : index
    %14 = vector.load %arg2[%c0_26, %c1_27, %c0_28, %c0_29] : memref<1x9x9x4xf32, #tpu.memory_space<vmem>>, vector<1x8x8x4xf32>
    %15 = vector.shape_cast %14 : vector<1x8x8x4xf32> to vector<8x8x4xf32>
    %c0_30 = arith.constant 0 : index
    %c1_31 = arith.constant 1 : index
    %c1_32 = arith.constant 1 : index
    %c0_33 = arith.constant 0 : index
    %16 = vector.load %arg1[%c0_30, %c1_31, %c1_32, %c0_33] : memref<1x9x9x4xf32, #tpu.memory_space<vmem>>, vector<1x8x8x4xf32>
    %17 = vector.shape_cast %16 : vector<1x8x8x4xf32> to vector<8x8x4xf32>
    %18 = tpu.concatenate %1, %3, %5, %7, %9, %11, %13, %15, %17 in 2 : vector<8x8x4xf32>, vector<8x8x4xf32>, vector<8x8x4xf32>, vector<8x8x4xf32>, vector<8x8x4xf32>, vector<8x8x4xf32>, vector<8x8x4xf32>, vector<8x8x4xf32>, vector<8x8x4xf32> -> vector<8x8x36xf32>
    %19 = vector.shape_cast %18 : vector<8x8x36xf32> to vector<64x36xf32>
    %20 = arith.truncf %19 : vector<64x36xf32> to vector<64x36xbf16>
    %c0_34 = arith.constant 0 : index
    %c0_35 = arith.constant 0 : index
    %21 = vector.load %arg5[%c0_34, %c0_35] : memref<36x8xbf16, #tpu.memory_space<vmem>>, vector<36x8xbf16>
    %cst = arith.constant dense<0.000000e+00> : vector<64x8xf32>
    %22 = tpu.matmul %20, %21, %cst {dimension_numbers = #tpu.dot_dimension_numbers<[1], [0], [0], [1], [0, 0, 1, 1], [], []>} : vector<64x36xbf16>, vector<36x8xbf16>, vector<64x8xf32> -> vector<64x8xf32>
    %c0_36 = arith.constant 0 : index
    %c0_37 = arith.constant 0 : index
    %23 = vector.load %arg6[%c0_36, %c0_37] : memref<1x8xf32, #tpu.memory_space<vmem>>, vector<1x8xf32>
    %24 = vector.broadcast %23 : vector<1x8xf32> to vector<64x8xf32>
    %25 = arith.addf %22, %24 : vector<64x8xf32>
    %c0_38 = arith.constant 0 : index
    %c0_39 = arith.constant 0 : index
    %c0_40 = arith.constant 0 : index
    %26 = vector.load %arg7[%c0_38, %c0_39, %c0_40] : memref<1x64x8xf32, #tpu.memory_space<vmem>>, vector<1x64x8xf32>
    %27 = vector.shape_cast %26 : vector<1x64x8xf32> to vector<64x8xf32>
    %28 = vector.shape_cast %25 : vector<64x8xf32> to vector<1x64x8xf32>
    tpu.vector_store %arg7[%c0_38, %c0_39, %c0_40], %28 {strides = array<i32>} : memref<1x64x8xf32, #tpu.memory_space<vmem>>, vector<1x64x8xf32>,
    %cst_41 = arith.constant dense<0.000000e+00> : vector<8xf32>
    %29 = vector.multi_reduction <add>, %25, %cst_41 [0] : vector<64x8xf32> to vector<8xf32>
    %30 = vector.shape_cast %29 : vector<8xf32> to vector<1x8xf32>
    %31 = arith.mulf %25, %25 : vector<64x8xf32>
    %cst_42 = arith.constant dense<0.000000e+00> : vector<8xf32>
    %32 = vector.multi_reduction <add>, %31, %cst_42 [0] : vector<64x8xf32> to vector<8xf32>
    %33 = vector.shape_cast %32 : vector<8xf32> to vector<1x8xf32>
    %34 = tpu.concatenate %30, %33 in 0 : vector<1x8xf32>, vector<1x8xf32> -> vector<2x8xf32>
    %c0_43 = arith.constant 0 : index
    %c0_44 = arith.constant 0 : index
    %c0_45 = arith.constant 0 : index
    %35 = vector.load %arg8[%c0_43, %c0_44, %c0_45] : memref<1x2x8xf32, #tpu.memory_space<vmem>>, vector<1x2x8xf32>
    %36 = vector.shape_cast %35 : vector<1x2x8xf32> to vector<2x8xf32>
    %37 = vector.shape_cast %34 : vector<2x8xf32> to vector<1x2x8xf32>
    tpu.vector_store %arg8[%c0_43, %c0_44, %c0_45], %37 {strides = array<i32>} : memref<1x2x8xf32, #tpu.memory_space<vmem>>, vector<1x2x8xf32>,
    return
  }
  func.func @transform_0(%arg0: i32) -> (i32, i32, i32, i32) {
    %c0_i32 = arith.constant 0 : i32
    %c0_i32_0 = arith.constant 0 : i32
    %c0_i32_1 = arith.constant 0 : i32
    %c0_i32_2 = arith.constant 0 : i32
    return %arg0, %c0_i32, %c0_i32_0, %c0_i32_1 : i32, i32, i32, i32
  }
  func.func @transform_1(%arg0: i32) -> (i32, i32, i32, i32) {
    %c0_i32 = arith.constant 0 : i32
    %c0_i32_0 = arith.constant 0 : i32
    %c0_i32_1 = arith.constant 0 : i32
    %c0_i32_2 = arith.constant 0 : i32
    return %arg0, %c0_i32, %c0_i32_0, %c0_i32_1 : i32, i32, i32, i32
  }
  func.func @transform_2(%arg0: i32) -> (i32, i32, i32, i32) {
    %c0_i32 = arith.constant 0 : i32
    %c0_i32_0 = arith.constant 0 : i32
    %c0_i32_1 = arith.constant 0 : i32
    %c0_i32_2 = arith.constant 0 : i32
    return %arg0, %c0_i32, %c0_i32_0, %c0_i32_1 : i32, i32, i32, i32
  }
  func.func @transform_3(%arg0: i32) -> (i32, i32, i32, i32) {
    %c0_i32 = arith.constant 0 : i32
    %c0_i32_0 = arith.constant 0 : i32
    %c0_i32_1 = arith.constant 0 : i32
    %c0_i32_2 = arith.constant 0 : i32
    return %arg0, %c0_i32, %c0_i32_0, %c0_i32_1 : i32, i32, i32, i32
  }
  func.func @transform_4(%arg0: i32) -> (i32, i32) {
    %c0_i32 = arith.constant 0 : i32
    %c0_i32_0 = arith.constant 0 : i32
    %c0_i32_1 = arith.constant 0 : i32
    return %c0_i32, %c0_i32_0 : i32, i32
  }
  func.func @transform_5(%arg0: i32) -> (i32, i32) {
    %c0_i32 = arith.constant 0 : i32
    %c0_i32_0 = arith.constant 0 : i32
    %c0_i32_1 = arith.constant 0 : i32
    return %c0_i32, %c0_i32_0 : i32, i32
  }
  func.func @transform_6(%arg0: i32) -> (i32, i32, i32) {
    %c0_i32 = arith.constant 0 : i32
    %c0_i32_0 = arith.constant 0 : i32
    %c0_i32_1 = arith.constant 0 : i32
    return %arg0, %c0_i32, %c0_i32_0 : i32, i32, i32
  }
  func.func @transform_7(%arg0: i32) -> (i32, i32, i32) {
    %c0_i32 = arith.constant 0 : i32
    %c0_i32_0 = arith.constant 0 : i32
    %c0_i32_1 = arith.constant 0 : i32
    return %arg0, %c0_i32, %c0_i32_0 : i32, i32, i32
  }
}

module attributes {stable_mosaic.version = 11 : i64} {
  func.func @_layer_conv_kernel(%arg0: i32, %arg1: memref<1x64x8xf32, #tpu.memory_space<vmem>>, %arg2: memref<2x2x8xf32, #tpu.memory_space<vmem>>, %arg3: memref<2x8xf32, #tpu.memory_space<vmem>>, %arg4: memref<72x8xbf16, #tpu.memory_space<vmem>>, %arg5: memref<1x8xf32, #tpu.memory_space<vmem>>, %arg6: memref<1x64x8xf32, #tpu.memory_space<vmem>>, %arg7: memref<1x2x8xf32, #tpu.memory_space<vmem>>, %arg8: memref<12x12x8xf32, #tpu.memory_space<vmem>>) attributes {dimension_semantics = [#tpu.dimension_semantics<parallel>], iteration_bounds = array<i64: 2>, scalar_prefetch = 0 : i64, scratch_operands = 1 : i64, tpu.core_type = #tpu.core_type<tc>, window_params = [{transform_indices = @transform_0, window_bounds = array<i64: 1, 64, 8>}, {pipeline_mode = #tpu.pipeline_mode<synchronous>, transform_indices = @transform_1, window_bounds = array<i64: 2, 2, 8>}, {pipeline_mode = #tpu.pipeline_mode<synchronous>, transform_indices = @transform_2, window_bounds = array<i64: 2, 8>}, {pipeline_mode = #tpu.pipeline_mode<synchronous>, transform_indices = @transform_3, window_bounds = array<i64: 72, 8>}, {pipeline_mode = #tpu.pipeline_mode<synchronous>, transform_indices = @transform_4, window_bounds = array<i64: 1, 8>}, {transform_indices = @transform_5, window_bounds = array<i64: 1, 64, 8>}, {transform_indices = @transform_6, window_bounds = array<i64: 1, 2, 8>}]} {
    %c0 = arith.constant 0 : index
    %c0_0 = arith.constant 0 : index
    %c0_1 = arith.constant 0 : index
    %0 = vector.load %arg2[%c0, %c0_0, %c0_1] : memref<2x2x8xf32, #tpu.memory_space<vmem>>, vector<2x2x8xf32>
    %cst = arith.constant dense<0.000000e+00> : vector<2x8xf32>
    %1 = vector.multi_reduction <add>, %0, %cst [0] : vector<2x2x8xf32> to vector<2x8xf32>
    %2 = vector.extract_strided_slice %1 {offsets = [0, 0], sizes = [1, 8], strides = [1, 1]} : vector<2x8xf32> to vector<1x8xf32>
    %cst_2 = arith.constant 7.812500e-03 : f32
    %3 = vector.broadcast %cst_2 : f32 to vector<1x8xf32>
    %4 = arith.mulf %2, %3 : vector<1x8xf32>
    %5 = vector.extract_strided_slice %1 {offsets = [1, 0], sizes = [1, 8], strides = [1, 1]} : vector<2x8xf32> to vector<1x8xf32>
    %cst_3 = arith.constant 7.812500e-03 : f32
    %6 = vector.broadcast %cst_3 : f32 to vector<1x8xf32>
    %7 = arith.mulf %5, %6 : vector<1x8xf32>
    %8 = arith.mulf %4, %4 : vector<1x8xf32>
    %9 = arith.subf %7, %8 : vector<1x8xf32>
    %cst_4 = arith.constant 0.000000e+00 : f32
    %10 = vector.broadcast %cst_4 : f32 to vector<1x8xf32>
    %11 = arith.maximumf %9, %10 : vector<1x8xf32>
    %c0_5 = arith.constant 0 : index
    %c0_6 = arith.constant 0 : index
    %12 = vector.load %arg3[%c0_5, %c0_6] : memref<2x8xf32, #tpu.memory_space<vmem>>, vector<1x8xf32>
    %cst_7 = arith.constant 9.99999974E-6 : f32
    %13 = vector.broadcast %cst_7 : f32 to vector<1x8xf32>
    %14 = arith.addf %11, %13 : vector<1x8xf32>
    %15 = math.rsqrt %14 : vector<1x8xf32>
    %16 = arith.mulf %12, %15 : vector<1x8xf32>
    %c1 = arith.constant 1 : index
    %c0_8 = arith.constant 0 : index
    %17 = vector.load %arg3[%c1, %c0_8] : memref<2x8xf32, #tpu.memory_space<vmem>>, vector<1x8xf32>
    %18 = arith.mulf %4, %16 : vector<1x8xf32>
    %19 = arith.subf %17, %18 : vector<1x8xf32>
    %c0_9 = arith.constant 0 : index
    %c0_10 = arith.constant 0 : index
    %c0_11 = arith.constant 0 : index
    %20 = vector.load %arg1[%c0_9, %c0_10, %c0_11] : memref<1x64x8xf32, #tpu.memory_space<vmem>>, vector<1x64x8xf32>
    %21 = vector.shape_cast %20 : vector<1x64x8xf32> to vector<64x8xf32>
    %22 = vector.broadcast %16 : vector<1x8xf32> to vector<64x8xf32>
    %23 = arith.mulf %21, %22 : vector<64x8xf32>
    %24 = vector.broadcast %19 : vector<1x8xf32> to vector<64x8xf32>
    %25 = arith.addf %23, %24 : vector<64x8xf32>
    %cst_12 = arith.constant 0.000000e+00 : f32
    %26 = vector.broadcast %cst_12 : f32 to vector<64x8xf32>
    %27 = arith.cmpf ogt, %25, %26 : vector<64x8xf32>
    %28 = math.exp %25 : vector<64x8xf32>
    %cst_13 = arith.constant 1.000000e+00 : f32
    %29 = vector.broadcast %cst_13 : f32 to vector<64x8xf32>
    %30 = arith.subf %28, %29 : vector<64x8xf32>
    %31 = arith.select %27, %25, %30 : vector<64x8xi1>, vector<64x8xf32>
    %cst_14 = arith.constant 0.000000e+00 : f32
    %32 = vector.broadcast %cst_14 : f32 to vector<12x12x8xf32>
    %c0_15 = arith.constant 0 : index
    %c0_16 = arith.constant 0 : index
    %c0_17 = arith.constant 0 : index
    %33 = vector.load %arg8[%c0_15, %c0_16, %c0_17] : memref<12x12x8xf32, #tpu.memory_space<vmem>>, vector<12x12x8xf32>
    tpu.vector_store %arg8[%c0_15, %c0_16, %c0_17], %32 {strides = array<i32>} : memref<12x12x8xf32, #tpu.memory_space<vmem>>, vector<12x12x8xf32>,
    %34 = vector.shape_cast %31 : vector<64x8xf32> to vector<8x8x8xf32>
    %c2 = arith.constant 2 : index
    %c2_18 = arith.constant 2 : index
    %c0_19 = arith.constant 0 : index
    %35 = vector.load %arg8[%c2, %c2_18, %c0_19] : memref<12x12x8xf32, #tpu.memory_space<vmem>>, vector<8x8x8xf32>
    tpu.vector_store %arg8[%c2, %c2_18, %c0_19], %34 {strides = array<i32>} : memref<12x12x8xf32, #tpu.memory_space<vmem>>, vector<8x8x8xf32>,
    %c0_20 = arith.constant 0 : index
    %c0_21 = arith.constant 0 : index
    %c0_22 = arith.constant 0 : index
    %36 = vector.load %arg8[%c0_20, %c0_21, %c0_22] : memref<12x12x8xf32, #tpu.memory_space<vmem>>, vector<8x8x8xf32>
    %c0_23 = arith.constant 0 : index
    %c2_24 = arith.constant 2 : index
    %c0_25 = arith.constant 0 : index
    %37 = vector.load %arg8[%c0_23, %c2_24, %c0_25] : memref<12x12x8xf32, #tpu.memory_space<vmem>>, vector<8x8x8xf32>
    %c0_26 = arith.constant 0 : index
    %c4 = arith.constant 4 : index
    %c0_27 = arith.constant 0 : index
    %38 = vector.load %arg8[%c0_26, %c4, %c0_27] : memref<12x12x8xf32, #tpu.memory_space<vmem>>, vector<8x8x8xf32>
    %c2_28 = arith.constant 2 : index
    %c0_29 = arith.constant 0 : index
    %c0_30 = arith.constant 0 : index
    %39 = vector.load %arg8[%c2_28, %c0_29, %c0_30] : memref<12x12x8xf32, #tpu.memory_space<vmem>>, vector<8x8x8xf32>
    %c2_31 = arith.constant 2 : index
    %c2_32 = arith.constant 2 : index
    %c0_33 = arith.constant 0 : index
    %40 = vector.load %arg8[%c2_31, %c2_32, %c0_33] : memref<12x12x8xf32, #tpu.memory_space<vmem>>, vector<8x8x8xf32>
    %c2_34 = arith.constant 2 : index
    %c4_35 = arith.constant 4 : index
    %c0_36 = arith.constant 0 : index
    %41 = vector.load %arg8[%c2_34, %c4_35, %c0_36] : memref<12x12x8xf32, #tpu.memory_space<vmem>>, vector<8x8x8xf32>
    %c4_37 = arith.constant 4 : index
    %c0_38 = arith.constant 0 : index
    %c0_39 = arith.constant 0 : index
    %42 = vector.load %arg8[%c4_37, %c0_38, %c0_39] : memref<12x12x8xf32, #tpu.memory_space<vmem>>, vector<8x8x8xf32>
    %c4_40 = arith.constant 4 : index
    %c2_41 = arith.constant 2 : index
    %c0_42 = arith.constant 0 : index
    %43 = vector.load %arg8[%c4_40, %c2_41, %c0_42] : memref<12x12x8xf32, #tpu.memory_space<vmem>>, vector<8x8x8xf32>
    %c4_43 = arith.constant 4 : index
    %c4_44 = arith.constant 4 : index
    %c0_45 = arith.constant 0 : index
    %44 = vector.load %arg8[%c4_43, %c4_44, %c0_45] : memref<12x12x8xf32, #tpu.memory_space<vmem>>, vector<8x8x8xf32>
    %45 = tpu.concatenate %36, %37, %38, %39, %40, %41, %42, %43, %44 in 2 : vector<8x8x8xf32>, vector<8x8x8xf32>, vector<8x8x8xf32>, vector<8x8x8xf32>, vector<8x8x8xf32>, vector<8x8x8xf32>, vector<8x8x8xf32>, vector<8x8x8xf32>, vector<8x8x8xf32> -> vector<8x8x72xf32>
    %46 = vector.shape_cast %45 : vector<8x8x72xf32> to vector<64x72xf32>
    %47 = arith.truncf %46 : vector<64x72xf32> to vector<64x72xbf16>
    %c0_46 = arith.constant 0 : index
    %c0_47 = arith.constant 0 : index
    %48 = vector.load %arg4[%c0_46, %c0_47] : memref<72x8xbf16, #tpu.memory_space<vmem>>, vector<72x8xbf16>
    %cst_48 = arith.constant dense<0.000000e+00> : vector<64x8xf32>
    %49 = tpu.matmul %47, %48, %cst_48 {dimension_numbers = #tpu.dot_dimension_numbers<[1], [0], [0], [1], [0, 0, 1, 1], [], []>} : vector<64x72xbf16>, vector<72x8xbf16>, vector<64x8xf32> -> vector<64x8xf32>
    %c0_49 = arith.constant 0 : index
    %c0_50 = arith.constant 0 : index
    %50 = vector.load %arg5[%c0_49, %c0_50] : memref<1x8xf32, #tpu.memory_space<vmem>>, vector<1x8xf32>
    %51 = vector.broadcast %50 : vector<1x8xf32> to vector<64x8xf32>
    %52 = arith.addf %49, %51 : vector<64x8xf32>
    %c0_51 = arith.constant 0 : index
    %c0_52 = arith.constant 0 : index
    %c0_53 = arith.constant 0 : index
    %53 = vector.load %arg6[%c0_51, %c0_52, %c0_53] : memref<1x64x8xf32, #tpu.memory_space<vmem>>, vector<1x64x8xf32>
    %54 = vector.shape_cast %53 : vector<1x64x8xf32> to vector<64x8xf32>
    %55 = vector.shape_cast %52 : vector<64x8xf32> to vector<1x64x8xf32>
    tpu.vector_store %arg6[%c0_51, %c0_52, %c0_53], %55 {strides = array<i32>} : memref<1x64x8xf32, #tpu.memory_space<vmem>>, vector<1x64x8xf32>,
    %cst_54 = arith.constant dense<0.000000e+00> : vector<8xf32>
    %56 = vector.multi_reduction <add>, %52, %cst_54 [0] : vector<64x8xf32> to vector<8xf32>
    %57 = vector.shape_cast %56 : vector<8xf32> to vector<1x8xf32>
    %58 = arith.mulf %52, %52 : vector<64x8xf32>
    %cst_55 = arith.constant dense<0.000000e+00> : vector<8xf32>
    %59 = vector.multi_reduction <add>, %58, %cst_55 [0] : vector<64x8xf32> to vector<8xf32>
    %60 = vector.shape_cast %59 : vector<8xf32> to vector<1x8xf32>
    %61 = tpu.concatenate %57, %60 in 0 : vector<1x8xf32>, vector<1x8xf32> -> vector<2x8xf32>
    %c0_56 = arith.constant 0 : index
    %c0_57 = arith.constant 0 : index
    %c0_58 = arith.constant 0 : index
    %62 = vector.load %arg7[%c0_56, %c0_57, %c0_58] : memref<1x2x8xf32, #tpu.memory_space<vmem>>, vector<1x2x8xf32>
    %63 = vector.shape_cast %62 : vector<1x2x8xf32> to vector<2x8xf32>
    %64 = vector.shape_cast %61 : vector<2x8xf32> to vector<1x2x8xf32>
    tpu.vector_store %arg7[%c0_56, %c0_57, %c0_58], %64 {strides = array<i32>} : memref<1x2x8xf32, #tpu.memory_space<vmem>>, vector<1x2x8xf32>,
    return
  }
  func.func @transform_0(%arg0: i32) -> (i32, i32, i32) {
    %c0_i32 = arith.constant 0 : i32
    %c0_i32_0 = arith.constant 0 : i32
    %c0_i32_1 = arith.constant 0 : i32
    return %arg0, %c0_i32, %c0_i32_0 : i32, i32, i32
  }
  func.func @transform_1(%arg0: i32) -> (i32, i32, i32) {
    %c0_i32 = arith.constant 0 : i32
    %c0_i32_0 = arith.constant 0 : i32
    %c0_i32_1 = arith.constant 0 : i32
    %c0_i32_2 = arith.constant 0 : i32
    return %c0_i32, %c0_i32_0, %c0_i32_1 : i32, i32, i32
  }
  func.func @transform_2(%arg0: i32) -> (i32, i32) {
    %c0_i32 = arith.constant 0 : i32
    %c0_i32_0 = arith.constant 0 : i32
    %c0_i32_1 = arith.constant 0 : i32
    return %c0_i32, %c0_i32_0 : i32, i32
  }
  func.func @transform_3(%arg0: i32) -> (i32, i32) {
    %c0_i32 = arith.constant 0 : i32
    %c0_i32_0 = arith.constant 0 : i32
    %c0_i32_1 = arith.constant 0 : i32
    return %c0_i32, %c0_i32_0 : i32, i32
  }
  func.func @transform_4(%arg0: i32) -> (i32, i32) {
    %c0_i32 = arith.constant 0 : i32
    %c0_i32_0 = arith.constant 0 : i32
    %c0_i32_1 = arith.constant 0 : i32
    return %c0_i32, %c0_i32_0 : i32, i32
  }
  func.func @transform_5(%arg0: i32) -> (i32, i32, i32) {
    %c0_i32 = arith.constant 0 : i32
    %c0_i32_0 = arith.constant 0 : i32
    %c0_i32_1 = arith.constant 0 : i32
    return %arg0, %c0_i32, %c0_i32_0 : i32, i32, i32
  }
  func.func @transform_6(%arg0: i32) -> (i32, i32, i32) {
    %c0_i32 = arith.constant 0 : i32
    %c0_i32_0 = arith.constant 0 : i32
    %c0_i32_1 = arith.constant 0 : i32
    return %arg0, %c0_i32, %c0_i32_0 : i32, i32, i32
  }
}

</mosaic_0001>

<bundles_post_ra>
// kernel: down_transition_forward.7
= control target key start
LH: loop header
LB: loop body
LE: loop exit
PB: predicated region body
PF: predicated region fallthrough
CT: control target
= control target key end

     0   :  { %9 = vsyncpa [#allocation3], 0  ;;  %s761_s0 = inlined_call_operand.vmem [shape: f32[2,64,8], index: 0, kind: input, shape index: {}]   ;;  %s762_s1 = inlined_call_operand.vmem [shape: f32[2,64,8], index: 1, kind: input, shape index: {}]   ;;  %s763_s2 = inlined_call_operand.vmem [shape: f32[2,2,8], index: 2, kind: input, shape index: {}]   ;;  %s764_s3 = inlined_call_operand.vmem [shape: f32[2,8], index: 3, kind: input, shape index: {}]   ;;  %s765_s4 = inlined_call_operand.hbm [shape: f32[2,64,8], index: 4, kind: output, shape index: {}]  }
   0x1   :  { %11 = vsyncpa [#allocation3 + $0x1], 0  ;;  %s600_s15 = smov 0   ;;  %s602_s16 = smov 0  }
   0x2   :  { %s604_s17 = smov 0   ;;  %s606_s18 = smov 0  }
   0x3 LB: > { %s621_s19 = sadd.s32 4294967295, %s570_s18   ;;  %s424_s20 = sadd.s32 4294967294, %s570_s18   ;;  %s570_s18 = sphi %s606_s18, %s771_s18   ;;  %s566_s17 = sphi %s604_s17, %s770_s17   ;;  %s562_s16 = sphi %s602_s16, %s769_s16   ;;  %s558_s15 = sphi %s600_s15, %s768_s15  }
   0x4   : > { %s625_s21 = sadd.s32 1, %s570_s18   ;;  %s118_s22 = sadd.s32 1, %s566_s17 }
   0x5   : > { %s115_s23 = ssub.s32 %s570_s18, %s625_s21  ;;  %p128_p0 = scmp.ne.s32.totalorder %s566_s17, %s562_s16 }
   0x6   : > { %p116_p1 = scmp.eq.s32.totalorder %s115_s23, 0  ;;  %p129_p2 = scmp.eq.s32.totalorder %s621_s19, 1 }
   0x7   : > { %p134_p3 = scmp.ne.s32.totalorder %s562_s16, %s558_s15  ;;  %p135_p4 = scmp.eq.s32.totalorder %s424_s20, 1 }
   0x8   : > { %s636_s24 = scalar_select %p116_p1, %s566_s17, %s118_s22  }
   0x9   : > { %p638_p5 = por %p129_p2, %p128_p0  ;;  %p642_p6 = por %p135_p4, %p134_p3 }
   0xa   : > { %p427_p7 = scmp.ge.s32.totalorder %s570_s18, 1  ;;  %p175_p8 = scmp.lt.s32.totalorder %s570_s18, 3 }
   0xc   : > { %p176_p9 = pnand %p427_p7, %p175_p8 }
   0xd   : > { %v216_v0 = vld [vmem:[%s763_s2] sm:$0x3] (!%p176_p9)  ;;  %v217_v1 = vld [vmem:[%s763_s2 + $0x2] sm:$0x3] (!%p176_p9)  ;;  %vm218_vm0 = vcmask (!%p176_p9), 58368   ;;  %p206_p10 = scmp.lt.s32.totalorder (!%p176_p9), %s621_s19, 1  ;;  %v255_v11 = vlaneseq (!%p176_p9) }
   0xe   : > { %179 = sbr.rel (%p176_p9) target bundleno = 90 (0x5a), region = 36  ;;  %v219_v2 = vsel (!%p176_p9), %vm218_vm0, %v216_v0, 0.0  ;;  %v220_v3 = vsel (!%p176_p9), %vm218_vm0, %v217_v1, 0.0  ;;  %v229_v14 = vld [vmem:[%s764_s3] sm:$0x1] (!%p176_p9)  ;;  %s203_s23 = sand.u32 (!%p176_p9), 1, %s562_s16  }
   0xf   : > { %v221_v4 = vadd.f32 (!%p176_p9), %v220_v3, %v219_v2  ;;  %v256_v12 = vshrl.u32 (!%p176_p9), %v255_v11, 7  ;;  %v236_v18 = vld [vmem:[%s764_s3 + $0x1] sm:$0x1] (!%p176_p9)  ;;  %s428_s27 = sshll.u32 (!%p176_p9), %s203_s23, 6  ;;  %vm327_vm2 = vcmask (!%p176_p9), 64512   ;;  %s448_s30 = sshll.u32 (!%p176_p9), %s621_s19, 10 }
  0x10   : > { %s691_s28 = scalar_lea.vmem (!%p176_p9), [#allocation2], %s428_s27  ;;  %s720_s7 = scalar_lea.sflag (!%p176_p9), [#allocation3], %s203_s23 }
  0x11   : > { %v222_v5 = vmul.f32 (!%p176_p9), 0.0078125, %v221_v4  ;;  %v257_v16 = vsub.s32 (!%p176_p9), 0, %v256_v12  ;;  %s350_s29 = sshll.u32 (!%p176_p9), %s691_s28, 4  ;;  %s705_s29 = int_to_ptr.vmem [resolvable:$true] %s350_s29 }
  0x12   : > { %s508_s8 = scalar_lea.vmem (!%p176_p9), %s705_s29, 1024 }
  0x13   : > { %v223_v6 = vmul.f32 (!%p176_p9), %v222_v5, %v222_v5  ;;  %p509_p11 = scmp.ne.s32.totalorder (!%p176_p9), %s705_s29, %s508_s8 }
  0x15   : > { %v225_v7 = vrot.slane %v223_v6, 7  ;;  %s207_s5 = scalar_select %p206_p10, %s621_s19, 1 }
  0x16   : > { %p510_p12 = pnand %p509_p11, %p638_p5 }
  0x17   : > { %v227_v8 = vsub.f32 %v222_v5, %v225_v7  ;;  %s446_s6 = sshll.u32 %s207_s5, 6 }
  0x18   : > { %s659_s9 = scalar_lea.vmem %s762_s1, %s446_s6  ;;  %s667_s14 = scalar_lea.vmem %s761_s0, %s446_s6 }
  0x19   : > { %v228_v9 = vmax.f32 %v227_v8, 0.0  ;;  %v247_v19 = vld [vmem:[%s659_s9] sm:$0xff]  ;;  %v248_v21 = vld [vmem:[%s659_s9 + $0x8] sm:$0xff]  ;;  %v249_v22 = vld [vmem:[%s659_s9 + $0x10] sm:$0xff]  ;;  %s712_s6 = scalar_lea.hbm %s765_s4, %s448_s30  ;;  %p511_p13 = pneg %p510_p12 }
  0x1a   : > { %v239_v20 = vld [vmem:[%s667_s14] sm:$0xff]  ;;  %v250_v23 = vld [vmem:[%s659_s9 + $0x18] sm:$0xff]  ;;  %v252_v27 = vld [vmem:[%s659_s9 + $0x28] sm:$0xff] }
  0x1b   : > { %v230_v10 = vadd.f32 1e-05, %v228_v9  ;;  %v251_v26 = vld [vmem:[%s659_s9 + $0x20] sm:$0xff]  ;;  %v253_v28 = vld [vmem:[%s659_s9 + $0x30] sm:$0xff]  ;;  %v240_v29 = vld [vmem:[%s667_s14 + $0x8] sm:$0xff] }
  0x1c   : > { %v241_v30 = vld [vmem:[%s667_s14 + $0x10] sm:$0xff]  ;;  %v242_v31 = vld [vmem:[%s667_s14 + $0x18] sm:$0xff]  ;;  %v243_v36 = vld [vmem:[%s667_s14 + $0x20] sm:$0xff] }
  0x1d   : > { %490 = vrsqrt.f32 %v230_v10  ;;  %v244_v37 = vld [vmem:[%s667_s14 + $0x28] sm:$0xff]  ;;  %v245_v38 = vld [vmem:[%s667_s14 + $0x30] sm:$0xff]  ;;  %v254_v51 = vld [vmem:[%s659_s9 + $0x38] sm:$0xff]  ;;  %s572_s9 = smov [#allocation2]  }
  0x1e   : > { %v246_v0 = vld [vmem:[%s667_s14 + $0x38] sm:$0xff]  ;;  %s512_s10 = sshll.u32 %s572_s9, 4  ;;  %s513_s10 = int_to_ptr.vmem [resolvable:$false] %s512_s10 }
  0x1f   : > { %s514_s11 = scalar_lea.vmem %s513_s10, 2048  ;;  %p515_p0 = scmp.lt.s32.totalorder %s705_s29, %s513_s10 }
  0x20   : > { %p516_p1 = scmp.lt.s32.totalorder %s514_s11, %s508_s8 }
  0x22   : > { %p517_p2 = por %p516_p1, %p515_p0 }
  0x24   : > { %p518_p3 = pnand %p517_p2, %p511_p13 }
  0x27   : > { %v491_v13 = vpop.eup %490 }
  0x28   : > { %v233_v15 = vrot.slane %v491_v13, 1 }
  0x2a   : > { %v235_v17 = vmul.f32 %v233_v15, %v229_v14 }
  0x2c   : > { %v237_v24 = vmul.f32 %v235_v17, %v222_v5  ;;  %v258_v25 = vrot.slane %v235_v17, %v257_v16 }
  0x2e   : > { %v238_v32 = vsub.f32 %v236_v18, %v237_v24  ;;  %v259_v33 = vmul.f32 %v258_v25, %v247_v19  ;;  %v260_v34 = vmul.f32 %v258_v25, %v248_v21  ;;  %v261_v35 = vmul.f32 %v258_v25, %v249_v22 }
  0x2f   : > { %v262_v39 = vmul.f32 %v258_v25, %v250_v23  ;;  %v263_v40 = vmul.f32 %v258_v25, %v251_v26  ;;  %v264_v41 = vmul.f32 %v258_v25, %v252_v27  ;;  %v265_v42 = vmul.f32 %v258_v25, %v253_v28 }
  0x30   : > { %v267_v43 = vadd.f32 %v259_v33, %v239_v20  ;;  %v278_v44 = vrot.slane %v238_v32, %v257_v16  ;;  %v268_v45 = vadd.f32 %v260_v34, %v240_v29  ;;  %v269_v46 = vadd.f32 %v261_v35, %v241_v30 }
  0x31   : > { %v270_v47 = vadd.f32 %v262_v39, %v242_v31  ;;  %v271_v48 = vadd.f32 %v263_v40, %v243_v36  ;;  %v272_v49 = vadd.f32 %v264_v41, %v244_v37  ;;  %v273_v50 = vadd.f32 %v265_v42, %v245_v38 }
  0x32   : > { %v279_v52 = vadd.f32 %v278_v44, %v267_v43  ;;  %v280_v53 = vadd.f32 %v278_v44, %v268_v45  ;;  %v281_v54 = vadd.f32 %v278_v44, %v269_v46  ;;  %v266_v61 = vmul.f32 %v258_v25, %v254_v51 }
  0x33   : > { %v282_v55 = vadd.f32 %v278_v44, %v270_v47  ;;  %v283_v56 = vadd.f32 %v278_v44, %v271_v48  ;;  %v284_v57 = vadd.f32 %v278_v44, %v272_v49  ;;  %v285_v60 = vadd.f32 %v278_v44, %v273_v50 }
  0x34   : > { %v295_v58 = vmul.f32 1.442695, %v279_v52  ;;  %v297_v59 = vmul.f32 1.442695, %v280_v53  ;;  %v299_v62 = vmul.f32 1.442695, %v281_v54  ;;  %v274_v4 = vadd.f32 %v266_v61, %v246_v0 }
  0x35   : > { %v301_v63 = vmul.f32 1.442695, %v282_v55  ;;  %v303_v1 = vmul.f32 1.442695, %v283_v56  ;;  %v305_v2 = vmul.f32 1.442695, %v284_v57 }
  0x36   : > { %492 = vpow2.f32 %v295_v58  ;;  %v307_v3 = vmul.f32 1.442695, %v285_v60  ;;  %v286_v5 = vadd.f32 %v278_v44, %v274_v4  ;;  %vm287_vm1 = vcmp.gt.f32.partialorder %v279_v52, 0.0 }
  0x37   : > { %494 = vpow2.f32 %v297_v59  ;;  %vm288_vm3 = vcmp.gt.f32.partialorder %v280_v53, 0.0  ;;  %vm289_vm4 = vcmp.gt.f32.partialorder %v281_v54, 0.0  ;;  %vm290_vm5 = vcmp.gt.f32.partialorder %v282_v55, 0.0 }
  0x38   : > { %496 = vpow2.f32 %v299_v62  ;;  %v309_v6 = vmul.f32 1.442695, %v286_v5  ;;  %vm291_vm6 = vcmp.gt.f32.partialorder %v283_v56, 0.0  ;;  %vm292_vm7 = vcmp.gt.f32.partialorder %v284_v57, 0.0 }
  0x39   : > { %498 = vpow2.f32 %v301_v63  ;;  %vm293_vm8 = vcmp.gt.f32.partialorder %v285_v60, 0.0  ;;  %vm294_vm9 = vcmp.gt.f32.partialorder %v286_v5, 0.0 }
  0x3a   : > { %500 = vpow2.f32 %v303_v1 }
  0x3b   : > { %502 = vpow2.f32 %v305_v2 }
  0x3c   : > { %504 = vpow2.f32 %v307_v3 }
  0x3d   : > { %506 = vpow2.f32 %v309_v6 }
  0x40   : > { %v493_v7 = vpop.eup %492 }
  0x41   : > { %v495_v8 = vpop.eup %494  ;;  %v433_v9 = vadd.f32 -1.0, %v493_v7 }
  0x42   : > { %v497_v10 = vpop.eup %496  ;;  %v434_v11 = vadd.f32 -1.0, %v495_v8 }
  0x43   : > { %v499_v12 = vpop.eup %498  ;;  %v319_v13 = vsel %vm287_vm1, %v279_v52, %v433_v9  ;;  %v435_v14 = vadd.f32 -1.0, %v497_v10 }
  0x44   : > { %v501_v15 = vpop.eup %500  ;;  %328 = vst.msk [vmem:[%s691_s28] sm:$0xff] %vm327_vm2, %v319_v13  ;;  %v320_v16 = vsel %vm288_vm3, %v280_v53, %v434_v11  ;;  %v436_v17 = vadd.f32 -1.0, %v499_v12 }
  0x45   : > { %v503_v18 = vpop.eup %502  ;;  %329 = vst.msk [vmem:[%s691_s28 + $0x8] sm:$0xff] %vm327_vm2, %v320_v16  ;;  %v321_v19 = vsel %vm289_vm4, %v281_v54, %v435_v14  ;;  %v437_v20 = vadd.f32 -1.0, %v501_v15 }
  0x46   : > { %v505_v21 = vpop.eup %504  ;;  %330 = vst.msk [vmem:[%s691_s28 + $0x10] sm:$0xff] %vm327_vm2, %v321_v19  ;;  %v322_v22 = vsel %vm290_vm5, %v282_v55, %v436_v17  ;;  %v438_v23 = vadd.f32 -1.0, %v503_v18 }
  0x47   : > { %331 = vst.msk [vmem:[%s691_s28 + $0x18] sm:$0xff] %vm327_vm2, %v322_v22  ;;  %v323_v24 = vsel %vm291_vm6, %v283_v56, %v437_v20  ;;  %v439_v25 = vadd.f32 -1.0, %v505_v21  ;;  %v507_v26 = vpop.eup %506 }
  0x48   : > { %332 = vst.msk [vmem:[%s691_s28 + $0x20] sm:$0xff] %vm327_vm2, %v323_v24  ;;  %v324_v27 = vsel %vm292_vm7, %v284_v57, %v438_v23  ;;  %v440_v29 = vadd.f32 -1.0, %v507_v26 }
  0x49   : > { %333 = vst.msk [vmem:[%s691_s28 + $0x28] sm:$0xff] %vm327_vm2, %v324_v27  ;;  %v325_v28 = vsel %vm293_vm8, %v285_v60, %v439_v25 }
  0x4a   : > { %334 = vst.msk [vmem:[%s691_s28 + $0x30] sm:$0xff] %vm327_vm2, %v325_v28  ;;  %v326_v30 = vsel %vm294_vm9, %v286_v5, %v440_v29 }
  0x4b   : > { %335 = vst.msk [vmem:[%s691_s28 + $0x38] sm:$0xff] %vm327_vm2, %v326_v30 }
  0x4c   : > { %521 = shalt.err (!%p518_p3)
}
  0x4d   : > { %s522_s12 = scalar_lea.hbm %s712_s6, 1024  ;;  %s526_s20 = scalar_lea.hbm %s765_s4, 2048 }
  0x4e   : > { %p523_p4 = scmp.ne.s32.totalorder %s712_s6, %s522_s12  ;;  %p527_p9 = scmp.lt.u32.totalorder %s712_s6, %s765_s4 }
  0x4f   : > { %p528_p10 = scmp.lt.u32.totalorder %s526_s20, %s522_s12  ;;  %p530_p12 = scmp.lt.u32.totalorder %s522_s12, %s712_s6 }
  0x50   : > { %p524_p7 = pnand %p523_p4, %p638_p5 }
  0x51   : > { %p529_p11 = por %p528_p10, %p527_p9 }
  0x52   : > { %p525_p8 = pneg %p524_p7 }
  0x53   : > { %p531_p13 = por %p530_p12, %p529_p11 }
  0x55   : > { %p532_p0 = pnand %p531_p13, %p525_p8 }
  0x57   : > { %535 = shalt.err (!%p532_p0)
}
  0x58   : > { %s573_s27 = smov 128   ;;  %s574_s28 = smov 8  }
  0x59   : > { %449 = dma.vmem_to_hbm [thread:$0]  (%p638_p5), %s705_s29, 1024, %s712_s6, %s720_s7, %s573_s27, %s573_s27, %s574_s28  }
  0x5a PF: > { %p455_p1 = scmp.ge.s32.totalorder %s570_s18, 2  ;;  %s365_s30 = sand.u32 1, %s558_s15  }
  0x5b   : > { %s366_s19 = scalar_lea.sflag [#allocation3], %s365_s30 }
  0x5c   : > { %p452_p2 = pnand %p455_p1, %p642_p6 }
  0x5e   : > { %553 = dma.done.wait (!%p452_p2), %s366_s19, 1024  }
  0x5f   : > { %555 = vsyncadd (!%p452_p2), %s366_s19, 4294966272  ;;  %p14_p3 = scmp.ge.s32.totalorder %s625_s21, 4   ;;  %s768_s15 = smov %s562_s16 }
  0x60   : > { %s769_s16 = smov %s566_s17  ;;  %s770_s17 = smov %s636_s24 }
  0x61   : > { %s771_s18 = smov %s625_s21  ;;  %16 = sbr.rel (!%p14_p3) target bundleno = 3 (0x3), region = 74 }
  0x68   :  { %371 = vsyncpa [#allocation3], 1 }
  0x69   :  { %373 = vsyncpa [#allocation3 + $0x1], 1 }

// kernel: down_transition_forward.4
= control target key start
LH: loop header
LB: loop body
LE: loop exit
PB: predicated region body
PF: predicated region fallthrough
CT: control target
= control target key end

     0   :  { %s1362_s24 = smov 0   ;;  %s1665_s0 = inlined_call_operand.vmem [shape: f32[2,9,9,4], index: 0, kind: input, shape index: {}]   ;;  %s1666_s1 = inlined_call_operand.vmem [shape: f32[2,9,9,4], index: 1, kind: input, shape index: {}]   ;;  %s1667_s2 = inlined_call_operand.vmem [shape: f32[2,9,9,4], index: 2, kind: input, shape index: {}]   ;;  %s1668_s3 = inlined_call_operand.vmem [shape: f32[2,9,9,4], index: 3, kind: input, shape index: {}]   ;;  %s1669_s4 = inlined_call_operand.vmem [shape: bf16[36,8], index: 4, kind: input, shape index: {}]   ;;  %s1670_s5 = inlined_call_operand.vmem [shape: f32[1,8], index: 5, kind: input, shape index: {}]   ;;  %s1671_s6 = inlined_call_operand.vmem [shape: f32[2,64,8], index: 6, kind: output, shape index: {0}]   ;;  %s1672_s7 = inlined_call_operand.vmem [shape: f32[2,2,8], index: 7, kind: output, shape index: {1}]  }
   0x1 LB: > { %s1050_s25 = sadd.s32 4294967295, %s1312_s24   ;;  %p1054_p0 = scmp.ge.s32.totalorder %s1312_s24, 1  ;;  %s1312_s24 = sphi %s1362_s24, %s18_s24  }
   0x2   : > { %p270_p1 = scmp.lt.s32.totalorder %s1312_s24, 3 }
   0x4   : > { %p271_p2 = pnand %p1054_p0, %p270_p1 }
   0x5   : > { %p321_p3 = scmp.lt.s32.totalorder (!%p271_p2), %s1050_s25, 1  ;;  %s1314_s13 = smov (!%p271_p2), 4   ;;  %v1303_v34 = vld [vmem:[%s1669_s4] sm:$0xff] (!%p271_p2)   ;;  %v1304_v35 = vld [vmem:[%s1669_s4 + $0x8] sm:$0xff] (!%p271_p2)   ;;  %vm797_vm0 = vcmask (!%p271_p2), 1041408   ;;  %vm681_vm1 = vcmask (!%p271_p2), 31744  }
   0x6   : > { %274 = sbr.rel (%p271_p2) target bundleno = 441 (0x1b9), region = 44  ;;  %s1315_s14 = smov (!%p271_p2), 8   ;;  %1104 = vmatprep.subr.bf16.mxu0 (!%p271_p2), %v1303_v34  ;;  %1118 = vmatprep.subr.bf16.mxu1 (!%p271_p2), %v1303_v34  ;;  %v1305_v39 = vld [vmem:[%s1669_s4 + $0x10] ss:$0 sps:$4 sm:$0x33] (!%p271_p2)   ;;  %vm690_vm2 = vcmask (!%p271_p2), 64512  }
   0x7   : > { %s1316_s18 = smov (!%p271_p2), 12   ;;  %s1317_s19 = smov (!%p271_p2), 16   ;;  %1105 = vmatpush3.bf16.msra.mxu0 (!%p271_p2), %v1303_v34  ;;  %1121 = vmatpush3.bf16.msra.mxu1 (!%p271_p2), %v1303_v34  ;;  %v799_v43 = vsel (!%p271_p2), %vm797_vm0, %v1305_v39, 0  ;;  %vm699_vm3 = vcmask (!%p271_p2), 97280   ;;  %vm708_vm4 = vcmask (!%p271_p2), 130048   ;;  %vm717_vm5 = vcmask (!%p271_p2), 162816  }
   0x8   : > { %1106 = vmatprep.subr.bf16.mxu0 (!%p271_p2), %v1304_v35  ;;  %s1319_s30 = smov (!%p271_p2), 24   ;;  %1119 = vmatprep.subr.bf16.mxu1 (!%p271_p2), %v1304_v35  ;;  %s1320_s8 = smov (!%p271_p2), 28   ;;  %vm726_vm6 = vcmask (!%p271_p2), 195584   ;;  %vm735_vm7 = vcmask (!%p271_p2), 228352   ;;  %vm744_vm8 = vcmask (!%p271_p2), 261120   ;;  %vm784_vm9 = vcmask (!%p271_p2), 293888  }
   0x9   : > { %s1321_s10 = smov (!%p271_p2), 32   ;;  %vm924_vm10 = vcmask (!%p271_p2), 1040384   ;;  %vm926_vm11 = vcmask (!%p271_p2), 58368  }
   0xb   : > { %1107 = vmatpush3.bf16.msra.mxu0 (!%p271_p2), %v1304_v35  ;;  %1122 = vmatpush3.bf16.msra.mxu1 (!%p271_p2), %v1304_v35 }
   0xc   : > { %1124 = vmatprep.subr.msk.bf16.mxu0 (!%p271_p2), %vm797_vm0, %v1305_v39  ;;  %1125 = vmatprep.subr.msk.bf16.mxu1 (!%p271_p2), %vm797_vm0, %v1305_v39 }
   0xd   : > { %s1674_s25 = smov (!%p321_p3, %s1050_s25), 1 }
   0xe   : > { %s1126_s26 = smul.u32 144, %s1674_s25  ;;  %s1061_s15 = sshll.u32 %s1674_s25, 1 }
   0xf   : > { %1109 = vmatpush3.bf16.msra.mxu0 %v799_v43  ;;  %1123 = vmatpush3.bf16.msra.mxu1 %v799_v43 }
  0x10   : > { %s1376_s29 = scalar_lea.vmem %s1666_s1, %s1126_s26  ;;  %s1381_s9 = scalar_lea.vmem %s1665_s0, %s1126_s26 }
  0x11   : > { %v359_v0 = vld [vmem:[%s1376_s29] sm:$0xff]  ;;  %v1385_v1 = vld [vmem:[%s1376_s29 + $0x10] sm:$0xff]  ;;  %s1401_s12 = scalar_lea.vmem %s1667_s2, %s1126_s26  ;;  %s1423_s17 = scalar_lea.vmem %s1668_s3, %s1126_s26 }
  0x12   : > { %v367_v2 = vld [vmem:[%s1381_s9 + $0x1] sm:$0xff]  ;;  %v1143_v3 = vpack.i.bf16 %v1385_v1, %v359_v0  ;;  %v1390_v4 = vld [vmem:[%s1381_s9 + $0x11] sm:$0xff]  ;;  %s1318_s26 = smov 20  }
  0x13   : > { %v1393_v5 = vld [vmem:[%s1376_s29 + $0x20] sm:$0xff]  ;;  %v1396_v6 = vld [vmem:[%s1376_s29 + $0x30] sm:$0xff]  ;;  %v1153_v7 = vpack.i.bf16 %v1390_v4, %v367_v2 }
  0x14   : > { %v1405_v8 = vld [vmem:[%s1381_s9 + $0x21] sm:$0xff]  ;;  %v1408_v9 = vld [vmem:[%s1381_s9 + $0x31] sm:$0xff]  ;;  %1144 = vrot.lane.b32.xlu0 %v1143_v3, %s1314_s13  ;;  %v1148_v10 = vpack.i.bf16 %v1396_v6, %v1393_v5  ;;  %v1203_v40 = vpack.i.bf16 %v1393_v5, %v1385_v1 }
  0x15   : > { %1154 = vrot.lane.b32.xlu1 %v1153_v7, %s1315_s14  ;;  %v1158_v11 = vpack.i.bf16 %v1408_v9, %v1405_v8  ;;  %v375_v12 = vld [vmem:[%s1401_s12] sm:$0xff]  ;;  %v376_v13 = vld [vmem:[%s1401_s12 + $0x10] sm:$0xff]  ;;  %v1213_v44 = vpack.i.bf16 %v1405_v8, %v1390_v4 }
  0x16   : > { %v377_v14 = vld [vmem:[%s1401_s12 + $0x20] sm:$0xff]  ;;  %v378_v15 = vld [vmem:[%s1401_s12 + $0x30] sm:$0xff]  ;;  %v1163_v16 = vpack.i.bf16 %v376_v13, %v375_v12 }
  0x17   : > { %v1168_v17 = vpack.i.bf16 %v378_v15, %v377_v14  ;;  %v383_v18 = vld [vmem:[%s1423_s17] sm:$0xff]  ;;  %v384_v19 = vld [vmem:[%s1423_s17 + $0x10] sm:$0xff] }
  0x18   : > { %1149 = vrot.lane.b32.xlu0 %v1148_v10, %s1314_s13  ;;  %v385_v20 = vld [vmem:[%s1423_s17 + $0x20] sm:$0xff]  ;;  %v386_v21 = vld [vmem:[%s1423_s17 + $0x30] sm:$0xff]  ;;  %v1173_v22 = vpack.i.bf16 %v384_v19, %v383_v18 }
  0x19   : > { %1159 = vrot.lane.b32.xlu1 %v1158_v11, %s1315_s14  ;;  %v1178_v23 = vpack.i.bf16 %v386_v21, %v385_v20  ;;  %v391_v24 = vld [vmem:[%s1401_s12 + $0x1] sm:$0xff]  ;;  %v392_v25 = vld [vmem:[%s1401_s12 + $0x11] sm:$0xff] }
  0x1a   : > { %v393_v26 = vld [vmem:[%s1401_s12 + $0x21] sm:$0xff]  ;;  %v394_v27 = vld [vmem:[%s1401_s12 + $0x31] sm:$0xff]  ;;  %v1183_v28 = vpack.i.bf16 %v392_v25, %v391_v24 }
  0x1b   : > { %v1188_v29 = vpack.i.bf16 %v394_v27, %v393_v26  ;;  %v1440_v30 = vld [vmem:[%s1381_s9 + $0x10] sm:$0xff]  ;;  %v1443_v31 = vld [vmem:[%s1381_s9 + $0x20] sm:$0xff] }
  0x1c   : > { %1164 = vrot.lane.b32.xlu0 %v1163_v16, %s1316_s18  ;;  %v1446_v32 = vld [vmem:[%s1381_s9 + $0x30] sm:$0xff]  ;;  %v1449_v33 = vld [vmem:[%s1381_s9 + $0x40] sm:$0xff]  ;;  %v1193_v36 = vpack.i.bf16 %v1443_v31, %v1440_v30 }
  0x1d   : > { %1169 = vrot.lane.b32.xlu1 %v1168_v17, %s1316_s18  ;;  %v1198_v37 = vpack.i.bf16 %v1449_v33, %v1446_v32  ;;  %v1073_v38 = vld [vmem:[%s1376_s29 + $0x40] sm:$0xff]  ;;  %v1473_v42 = vld [vmem:[%s1376_s29 + $0x50] sm:$0xff] }
  0x1e   : > { %v1208_v41 = vpack.i.bf16 %v1073_v38, %v1396_v6  ;;  %v1218_v45 = vpack.i.bf16 %v1473_v42, %v1073_v38  ;;  %v1081_v46 = vld [vmem:[%s1381_s9 + $0x41] sm:$0xff]  ;;  %v366_v48 = vld [vmem:[%s1376_s29 + $0x70] sm:$0xff] }
  0x1f   : > { %v365_v47 = vld [vmem:[%s1376_s29 + $0x60] sm:$0xff]  ;;  %v1223_v49 = vpack.i.bf16 %v1081_v46, %v1408_v9  ;;  %v372_v51 = vld [vmem:[%s1381_s9 + $0x51] sm:$0xff] }
  0x20   : > { %1174 = vrot.lane.b32.xlu0 %v1173_v22, %s1317_s19  ;;  %v1228_v50 = vpack.i.bf16 %v366_v48, %v365_v47  ;;  %v373_v52 = vld [vmem:[%s1381_s9 + $0x61] sm:$0xff]  ;;  %v374_v53 = vld [vmem:[%s1381_s9 + $0x71] sm:$0xff]  ;;  %v1233_v54 = vpack.i.bf16 %v372_v51, %v1081_v46  ;;  %v1283_v17 = vpack.i.bf16 %v365_v47, %v1473_v42 }
  0x21   : > { %1179 = vrot.lane.b32.xlu1 %v1178_v23, %s1317_s19  ;;  %v1238_v55 = vpack.i.bf16 %v374_v53, %v373_v52  ;;  %v379_v56 = vld [vmem:[%s1401_s12 + $0x40] sm:$0xff]  ;;  %v380_v57 = vld [vmem:[%s1401_s12 + $0x50] sm:$0xff]  ;;  %v1293_v20 = vpack.i.bf16 %v373_v52, %v372_v51 }
  0x22   : > { %v381_v58 = vld [vmem:[%s1401_s12 + $0x60] sm:$0xff]  ;;  %v382_v59 = vld [vmem:[%s1401_s12 + $0x70] sm:$0xff]  ;;  %v1243_v60 = vpack.i.bf16 %v380_v57, %v379_v56 }
  0x23   : > { %v1248_v61 = vpack.i.bf16 %v382_v59, %v381_v58  ;;  %v387_v62 = vld [vmem:[%s1423_s17 + $0x40] sm:$0xff]  ;;  %v388_v63 = vld [vmem:[%s1423_s17 + $0x50] sm:$0xff] }
  0x24   : > { %1184 = vrot.lane.b32.xlu0 %v1183_v28, %s1318_s26  ;;  %v389_v0 = vld [vmem:[%s1423_s17 + $0x60] sm:$0xff]  ;;  %v390_v1 = vld [vmem:[%s1423_s17 + $0x70] sm:$0xff]  ;;  %v1253_v2 = vpack.i.bf16 %v388_v63, %v387_v62 }
  0x25   : > { %1189 = vrot.lane.b32.xlu1 %v1188_v29, %s1318_s26  ;;  %v1258_v3 = vpack.i.bf16 %v390_v1, %v389_v0  ;;  %v395_v4 = vld [vmem:[%s1401_s12 + $0x41] sm:$0xff]  ;;  %v396_v5 = vld [vmem:[%s1401_s12 + $0x51] sm:$0xff] }
  0x26   : > { %v397_v6 = vld [vmem:[%s1401_s12 + $0x61] sm:$0xff]  ;;  %v398_v7 = vld [vmem:[%s1401_s12 + $0x71] sm:$0xff]  ;;  %v1263_v8 = vpack.i.bf16 %v396_v5, %v395_v4 }
  0x27   : > { %v1268_v9 = vpack.i.bf16 %v398_v7, %v397_v6  ;;  %v1510_v10 = vld [vmem:[%s1381_s9 + $0x50] sm:$0xff]  ;;  %v1513_v11 = vld [vmem:[%s1381_s9 + $0x60] sm:$0xff] }
  0x28   : > { %1194 = vrot.lane.b32.xlu0 %v1193_v36, %s1319_s30  ;;  %v1516_v12 = vld [vmem:[%s1381_s9 + $0x70] sm:$0xff]  ;;  %v1069_v13 = vld [vmem:[%s1381_s9 + $0x80] sm:$0xff]  ;;  %v1273_v14 = vpack.i.bf16 %v1513_v11, %v1510_v10 }
  0x29   : > { %1199 = vrot.lane.b32.xlu1 %v1198_v37, %s1319_s30  ;;  %v1278_v15 = vpack.i.bf16 %v1069_v13, %v1516_v12  ;;  %v1077_v16 = vld [vmem:[%s1376_s29 + $0x80] sm:$0xff]  ;;  %s1096_s29 = sshll.u32 %s1674_s25, 6 }
  0x2a   : > { %v1288_v18 = vpack.i.bf16 %v1077_v16, %v366_v48  ;;  %v1085_v19 = vld [vmem:[%s1381_s9 + $0x81] sm:$0xff] }
  0x2b   : > { %v1298_v21 = vpack.i.bf16 %v1085_v19, %v374_v53  ;;  %v351_v36 = vld [vmem:[%s1381_s9] sm:$0xff] }
  0x2c   : > { %1204 = vrot.lane.b32.xlu0 %v1203_v40, %s1320_s8 }
  0x2d   : > { %1209 = vrot.lane.b32.xlu1 %v1208_v41, %s1320_s8 }
  0x30   : > { %1214 = vrot.lane.b32.xlu0 %v1213_v44, %s1321_s10 }
  0x31   : > { %1219 = vrot.lane.b32.xlu1 %v1218_v45, %s1314_s13 }
  0x34   : > { %1224 = vrot.lane.b32.xlu0 %v1223_v49, %s1321_s10 }
  0x35   : > { %1229 = vrot.lane.b32.xlu1 %v1228_v50, %s1314_s13 }
  0x38   : > { %1234 = vrot.lane.b32.xlu0 %v1233_v54, %s1315_s14 }
  0x39   : > { %1239 = vrot.lane.b32.xlu1 %v1238_v55, %s1315_s14  ;;  %s1624_s14 = scalar_lea.vmem %s1671_s6, %s1096_s29 }
  0x3c   : > { %1244 = vrot.lane.b32.xlu0 %v1243_v60, %s1316_s18 }
  0x3d   : > { %1249 = vrot.lane.b32.xlu1 %v1248_v61, %s1316_s18  ;;  %s349_s18 = scalar_lea.vmem %s1672_s7, %s1061_s15 }
  0x40   : > { %1254 = vrot.lane.b32.xlu0 %v1253_v2, %s1317_s19 }
  0x41   : > { %1259 = vrot.lane.b32.xlu1 %v1258_v3, %s1317_s19 }
  0x44   : > { %1264 = vrot.lane.b32.xlu0 %v1263_v8, %s1318_s26 }
  0x45   : > { %1269 = vrot.lane.b32.xlu1 %v1268_v9, %s1318_s26 }
  0x48   : > { %1274 = vrot.lane.b32.xlu0 %v1273_v14, %s1319_s30 }
  0x49   : > { %1279 = vrot.lane.b32.xlu1 %v1278_v15, %s1319_s30 }
  0x4c   : > { %1284 = vrot.lane.b32.xlu0 %v1283_v17, %s1320_s8 }
  0x4d   : > { %1289 = vrot.lane.b32.xlu1 %v1288_v18, %s1320_s8 }
  0x50   : > { %1294 = vrot.lane.b32.xlu0 %v1293_v20, %s1321_s10 }
  0x51   : > { %1299 = vrot.lane.b32.xlu1 %v1298_v21, %s1321_s10 }
  0x86   : > { %v1145_v22 = vpop.permute.xlu0 %1144 }
  0x87   : > { %v1155_v23 = vpop.permute.xlu1 %1154  ;;  %v1147_v34 = vunpack.i.h.bf16 %v1145_v22  ;;  %v1146_v35 = vunpack.i.l.bf16 %v1145_v22 }
  0x88   : > { %v1157_v41 = vunpack.i.h.bf16 %v1155_v23  ;;  %v1156_v42 = vunpack.i.l.bf16 %v1155_v23 }
  0x89   : > { %v682_v43 = vsel %vm681_vm1, %v351_v36, %v1146_v35  ;;  %v683_v44 = vsel %vm681_vm1, %v1440_v30, %v1147_v34 }
  0x8a   : > { %v1150_v24 = vpop.permute.xlu0 %1149  ;;  %v691_v55 = vsel %vm690_vm2, %v682_v43, %v1156_v42  ;;  %v692_v30 = vsel %vm690_vm2, %v683_v44, %v1157_v41 }
  0x8b   : > { %v1160_v25 = vpop.permute.xlu1 %1159  ;;  %v1152_v37 = vunpack.i.h.bf16 %v1150_v24  ;;  %v1151_v38 = vunpack.i.l.bf16 %v1150_v24 }
  0x8c   : > { %v1162_v45 = vunpack.i.h.bf16 %v1160_v25  ;;  %v1161_v46 = vunpack.i.l.bf16 %v1160_v25 }
  0x8d   : > { %v684_v47 = vsel %vm681_vm1, %v1443_v31, %v1151_v38  ;;  %v685_v48 = vsel %vm681_vm1, %v1446_v32, %v1152_v37 }
  0x8e   : > { %v1165_v26 = vpop.permute.xlu0 %1164  ;;  %v693_v56 = vsel %vm690_vm2, %v684_v47, %v1161_v46  ;;  %v694_v31 = vsel %vm690_vm2, %v685_v48, %v1162_v45 }
  0x8f   : > { %v1170_v27 = vpop.permute.xlu1 %1169  ;;  %v1167_v49 = vunpack.i.h.bf16 %v1165_v26  ;;  %v1166_v50 = vunpack.i.l.bf16 %v1165_v26 }
  0x90   : > { %v1172_v52 = vunpack.i.h.bf16 %v1170_v27  ;;  %v1171_v53 = vunpack.i.l.bf16 %v1170_v27 }
  0x91   : > { %v700_v58 = vsel %vm699_vm3, %v691_v55, %v1166_v50  ;;  %v701_v59 = vsel %vm699_vm3, %v692_v30, %v1167_v49 }
  0x92   : > { %v1175_v28 = vpop.permute.xlu0 %1174  ;;  %v702_v63 = vsel %vm699_vm3, %v693_v56, %v1171_v53  ;;  %v703_v0 = vsel %vm699_vm3, %v694_v31, %v1172_v52 }
  0x93   : > { %v1533_v29 = vpop.permute.xlu1 %1179  ;;  %v1177_v57 = vunpack.i.h.bf16 %v1175_v28  ;;  %v1176_v32 = vunpack.i.l.bf16 %v1175_v28 }
  0x94   : > { %v1182_v4 = vunpack.i.h.bf16 %v1533_v29  ;;  %v1181_v5 = vunpack.i.l.bf16 %v1533_v29 }
  0x95   : > { %v709_v8 = vsel %vm708_vm4, %v700_v58, %v1176_v32  ;;  %v710_v9 = vsel %vm708_vm4, %v701_v59, %v1177_v57 }
  0x96   : > { %v1185_v39 = vpop.permute.xlu0 %1184  ;;  %v711_v29 = vsel %vm708_vm4, %v702_v63, %v1181_v5  ;;  %v712_v34 = vsel %vm708_vm4, %v703_v0, %v1182_v4 }
  0x97   : > { %v1536_v40 = vpop.permute.xlu1 %1189  ;;  %v1187_v60 = vunpack.i.h.bf16 %v1185_v39  ;;  %v1186_v61 = vunpack.i.l.bf16 %v1185_v39 }
  0x98   : > { %v1192_v13 = vunpack.i.h.bf16 %v1536_v40  ;;  %v1191_v14 = vunpack.i.l.bf16 %v1536_v40 }
  0x99   : > { %v718_v15 = vsel %vm717_vm5, %v709_v8, %v1186_v61  ;;  %v719_v16 = vsel %vm717_vm5, %v710_v9, %v1187_v60 }
  0x9a   : > { %v1195_v51 = vpop.permute.xlu0 %1194  ;;  %v720_v37 = vsel %vm717_vm5, %v711_v29, %v1191_v14  ;;  %v721_v38 = vsel %vm717_vm5, %v712_v34, %v1192_v13 }
  0x9b   : > { %v1200_v54 = vpop.permute.xlu1 %1199  ;;  %v1197_v1 = vunpack.i.h.bf16 %v1195_v51  ;;  %v1196_v2 = vunpack.i.l.bf16 %v1195_v51 }
  0x9c   : > { %v1202_v17 = vunpack.i.h.bf16 %v1200_v54  ;;  %v1201_v18 = vunpack.i.l.bf16 %v1200_v54 }
  0x9d   : > { %v727_v20 = vsel %vm726_vm6, %v718_v15, %v1196_v2  ;;  %v728_v21 = vsel %vm726_vm6, %v719_v16, %v1197_v1 }
  0x9e   : > { %v1205_v62 = vpop.permute.xlu0 %1204  ;;  %v729_v41 = vsel %vm726_vm6, %v720_v37, %v1201_v18  ;;  %v730_v42 = vsel %vm726_vm6, %v721_v38, %v1202_v17 }
  0x9f   : > { %v1210_v3 = vpop.permute.xlu1 %1209  ;;  %v1207_v6 = vunpack.i.h.bf16 %v1205_v62  ;;  %v1206_v7 = vunpack.i.l.bf16 %v1205_v62 }
  0xa0   : > { %v1212_v25 = vunpack.i.h.bf16 %v1210_v3  ;;  %v1211_v26 = vunpack.i.l.bf16 %v1210_v3 }
  0xa1   : > { %v736_v27 = vsel %vm735_vm7, %v727_v20, %v1206_v7  ;;  %v737_v28 = vsel %vm735_vm7, %v728_v21, %v1207_v6 }
  0xa2   : > { %v1215_v19 = vpop.permute.xlu0 %1214  ;;  %v738_v46 = vsel %vm735_vm7, %v729_v41, %v1211_v26  ;;  %v739_v47 = vsel %vm735_vm7, %v730_v42, %v1212_v25 }
  0xa3   : > { %v1217_v22 = vunpack.i.h.bf16 %v1215_v19  ;;  %v1216_v23 = vunpack.i.l.bf16 %v1215_v19  ;;  %v1220_v24 = vpop.permute.xlu1 %1219 }
  0xa4   : > { %v1222_v56 = vunpack.i.h.bf16 %v1220_v24  ;;  %v1221_v31 = vunpack.i.l.bf16 %v1220_v24 }
  0xa5   : > { %v745_v35 = vsel %vm744_vm8, %v736_v27, %v1216_v23  ;;  %v746_v36 = vsel %vm744_vm8, %v737_v28, %v1217_v22 }
  0xa6   : > { %v1225_v39 = vpop.permute.xlu0 %1224  ;;  %v753_v40 = vpack.c.bf16 %v746_v36, %v745_v35  ;;  %v686_v2 = vsel %vm681_vm1, %v1449_v33, %v1221_v31  ;;  %v687_v3 = vsel %vm681_vm1, %v1510_v10, %v1222_v56 }
  0xa7   : > { %v1227_v43 = vunpack.i.h.bf16 %v1225_v39  ;;  %v1226_v44 = vunpack.i.l.bf16 %v1225_v39  ;;  %v1230_v45 = vpop.permute.xlu1 %1229 }
  0xa8   : > { %1110 = vmatprep.mubr.msk.bf16.mxu0 %vm784_vm9, %v753_v40  ;;  %v1232_v57 = vunpack.i.h.bf16 %v1230_v45  ;;  %v1231_v32 = vunpack.i.l.bf16 %v1230_v45 }
  0xa9   : > { %v747_v48 = vsel %vm744_vm8, %v738_v46, %v1226_v44  ;;  %v748_v49 = vsel %vm744_vm8, %v739_v47, %v1227_v43 }
  0xaa   : > { %v754_v50 = vpack.c.bf16 %v748_v49, %v747_v48  ;;  %v1235_v51 = vpop.permute.xlu0 %1234  ;;  %v688_v6 = vsel %vm681_vm1, %v1513_v11, %v1231_v32  ;;  %v689_v7 = vsel %vm681_vm1, %v1516_v12, %v1232_v57 }
  0xab   : > { %v1240_v52 = vpop.permute.xlu1 %1239  ;;  %v1237_v58 = vunpack.i.h.bf16 %v1235_v51  ;;  %v1236_v59 = vunpack.i.l.bf16 %v1235_v51 }
  0xac   : > { %1111 = vmatmul.mubr.msk.bf16.vlgmr.msra.gmra.mrb[0].mxu0 %vm784_vm9, %v754_v50  ;;  %v1242_v61 = vunpack.i.h.bf16 %v1240_v52  ;;  %v1241_v62 = vunpack.i.l.bf16 %v1240_v52 }
  0xad   : > { %v695_v8 = vsel %vm690_vm2, %v686_v2, %v1236_v59  ;;  %v696_v9 = vsel %vm690_vm2, %v687_v3, %v1237_v58 }
  0xae   : > { %v1245_v53 = vpop.permute.xlu0 %1244  ;;  %v697_v14 = vsel %vm690_vm2, %v688_v6, %v1241_v62  ;;  %v698_v33 = vsel %vm690_vm2, %v689_v7, %v1242_v61 }
  0xaf   : > { %v1250_v54 = vpop.permute.xlu1 %1249  ;;  %v1247_v0 = vunpack.i.h.bf16 %v1245_v53  ;;  %v1246_v1 = vunpack.i.l.bf16 %v1245_v53 }
  0xb0   : > { %v1252_v4 = vunpack.i.h.bf16 %v1250_v54  ;;  %v1251_v5 = vunpack.i.l.bf16 %v1250_v54 }
  0xb1   : > { %v704_v17 = vsel %vm699_vm3, %v695_v8, %v1246_v1  ;;  %v705_v18 = vsel %vm699_vm3, %v696_v9, %v1247_v0  ;;  %v1086_v0 = vld [vmem:[%s1670_s5] ss:$0 sm:$0xff] }
  0xb2   : > { %v1255_v55 = vpop.permute.xlu0 %1254  ;;  %v706_v12 = vsel %vm699_vm3, %v697_v14, %v1251_v5  ;;  %v707_v20 = vsel %vm699_vm3, %v698_v33, %v1252_v4 }
  0xb3   : > { %v1260_v30 = vpop.permute.xlu1 %1259  ;;  %v1257_v15 = vunpack.i.h.bf16 %v1255_v55  ;;  %v1256_v16 = vunpack.i.l.bf16 %v1255_v55 }
  0xb4   : > { %v1262_v11 = vunpack.i.h.bf16 %v1260_v30  ;;  %v1261_v19 = vunpack.i.l.bf16 %v1260_v30 }
  0xb5   : > { %v713_v28 = vsel %vm708_vm4, %v704_v17, %v1256_v16  ;;  %v714_v29 = vsel %vm708_vm4, %v705_v18, %v1257_v15 }
  0xb6   : > { %v1265_v60 = vpop.permute.xlu0 %1264  ;;  %v715_v37 = vsel %vm708_vm4, %v706_v12, %v1261_v19  ;;  %v716_v38 = vsel %vm708_vm4, %v707_v20, %v1262_v11 }
  0xb7   : > { %v1270_v63 = vpop.permute.xlu1 %1269  ;;  %v1267_v21 = vunpack.i.h.bf16 %v1265_v60  ;;  %v1266_v22 = vunpack.i.l.bf16 %v1265_v60 }
  0xb8   : > { %v1272_v23 = vunpack.i.h.bf16 %v1270_v63  ;;  %v1271_v24 = vunpack.i.l.bf16 %v1270_v63 }
  0xb9   : > { %v722_v41 = vsel %vm717_vm5, %v713_v28, %v1266_v22  ;;  %v723_v42 = vsel %vm717_vm5, %v714_v29, %v1267_v21 }
  0xba   : > { %v1275_v13 = vpop.permute.xlu0 %1274  ;;  %v724_v45 = vsel %vm717_vm5, %v715_v37, %v1271_v24  ;;  %v725_v46 = vsel %vm717_vm5, %v716_v38, %v1272_v23 }
  0xbb   : > { %v1280_v10 = vpop.permute.xlu1 %1279  ;;  %v1277_v25 = vunpack.i.h.bf16 %v1275_v13  ;;  %v1276_v26 = vunpack.i.l.bf16 %v1275_v13 }
  0xbc   : > { %v1282_v34 = vunpack.i.h.bf16 %v1280_v10  ;;  %v1281_v35 = vunpack.i.l.bf16 %v1280_v10 }
  0xbd   : > { %v731_v47 = vsel %vm726_vm6, %v722_v41, %v1276_v26  ;;  %v732_v48 = vsel %vm726_vm6, %v723_v42, %v1277_v25 }
  0xbe   : > { %v1285_v27 = vpop.permute.xlu0 %1284  ;;  %v733_v50 = vsel %vm726_vm6, %v724_v45, %v1281_v35  ;;  %v734_v51 = vsel %vm726_vm6, %v725_v46, %v1282_v34 }
  0xbf   : > { %v1290_v36 = vpop.permute.xlu1 %1289  ;;  %v1287_v39 = vunpack.i.h.bf16 %v1285_v27  ;;  %v1286_v40 = vunpack.i.l.bf16 %v1285_v27 }
  0xc0   : > { %v1292_v43 = vunpack.i.h.bf16 %v1290_v36  ;;  %v1291_v44 = vunpack.i.l.bf16 %v1290_v36 }
  0xc1   : > { %v740_v56 = vsel %vm735_vm7, %v731_v47, %v1286_v40  ;;  %v741_v31 = vsel %vm735_vm7, %v732_v48, %v1287_v39 }
  0xc2   : > { %v1295_v49 = vpop.permute.xlu0 %1294  ;;  %v742_v57 = vsel %vm735_vm7, %v733_v50, %v1291_v44  ;;  %v743_v32 = vsel %vm735_vm7, %v734_v51, %v1292_v43 }
  0xc3   : > { %v1297_v52 = vunpack.i.h.bf16 %v1295_v49  ;;  %v1296_v53 = vunpack.i.l.bf16 %v1295_v49  ;;  %v1300_v54 = vpop.permute.xlu1 %1299 }
  0xc4   : > { %v1302_v55 = vunpack.i.h.bf16 %v1300_v54  ;;  %v1301_v30 = vunpack.i.l.bf16 %v1300_v54 }
  0xc5   : > { %v749_v58 = vsel %vm744_vm8, %v740_v56, %v1296_v53  ;;  %v750_v59 = vsel %vm744_vm8, %v741_v31, %v1297_v52 }
  0xc6   : > { %v751_v60 = vsel %vm744_vm8, %v742_v57, %v1301_v30  ;;  %v752_v61 = vsel %vm744_vm8, %v743_v32, %v1302_v55  ;;  %v755_v62 = vpack.c.bf16 %v750_v59, %v749_v58 }
  0xc7   : > { %v756_v63 = vpack.c.bf16 %v752_v61, %v751_v60 }
  0xc8   : > { %1114 = vmatprep.mubr.msk.bf16.mxu1 %vm784_vm9, %v755_v62 }
  0xc9   : > { %1115 = vmatmul.mubr.msk.bf16.vlgmr.msra.gmra.mrb[0].mxu1 %vm784_vm9, %v756_v63 }
 0x17f   : > { %v1112_v1 = vpop.f32.mrb[0].mxu0 }
 0x180   : > { %v844_v2 = vadd.f32 %v1112_v1, %v1086_v0  ;;  %v835_v3 = vpop.f32.mrb[1].mxu0 }
 0x181   : > { %v836_v4 = vadd.f32 %v1086_v0, %v835_v3  ;;  %v1113_v5 = vpop.f32.mrb[2].mxu0 }
 0x182   : > { %868 = vst.msk [vmem:[%s1624_s14 + $0x10] sm:$0xff] %vm690_vm2, %v844_v2  ;;  %v847_v6 = vadd.f32 %v1113_v5, %v1086_v0  ;;  %v838_v7 = vpop.f32.mrb[3].mxu0  ;;  %v897_v13 = vmul.f32 %v844_v2, %v844_v2  ;;  %v877_v10 = vsel %vm690_vm2, %v844_v2, 0.0 }
 0x183   : > { %866 = vst.msk [vmem:[%s1624_s14] sm:$0xff] %vm690_vm2, %v836_v4  ;;  %v895_v8 = vmul.f32 %v836_v4, %v836_v4  ;;  %v839_v9 = vadd.f32 %v1086_v0, %v838_v7  ;;  %v874_v14 = vsel %vm690_vm2, %v836_v4, 0.0 }
 0x184   : > { %869 = vst.msk [vmem:[%s1624_s14 + $0x18] sm:$0xff] %vm690_vm2, %v847_v6  ;;  %v898_v18 = vmul.f32 %v847_v6, %v847_v6  ;;  %v906_v20 = vsel %vm690_vm2, %v897_v13, 0.0  ;;  %v879_v21 = vsel %vm690_vm2, %v847_v6, 0.0 }
 0x185   : > { %867 = vst.msk [vmem:[%s1624_s14 + $0x8] sm:$0xff] %vm690_vm2, %v839_v9  ;;  %v875_v33 = vsel %vm690_vm2, %v839_v9, 0.0  ;;  %v896_v15 = vmul.f32 %v839_v9, %v839_v9  ;;  %v903_v17 = vsel %vm690_vm2, %v895_v8, 0.0 }
 0x186   : > { %v876_v16 = vadd.f32 %v875_v33, %v874_v14  ;;  %v908_v24 = vsel %vm690_vm2, %v898_v18, 0.0 }
 0x187   : > { %v904_v11 = vsel %vm690_vm2, %v896_v15, 0.0 }
 0x188   : > { %v878_v19 = vadd.f32 %v877_v10, %v876_v16  ;;  %v905_v12 = vadd.f32 %v904_v11, %v903_v17 }
 0x18a   : > { %v907_v22 = vadd.f32 %v906_v20, %v905_v12  ;;  %v880_v23 = vadd.f32 %v879_v21, %v878_v19 }
 0x18c   : > { %v909_v25 = vadd.f32 %v908_v24, %v907_v22 }
 0x19c   : > { %v1116_v26 = vpop.f32.mrb[0].mxu1 }
 0x19d   : > { %v860_v27 = vadd.f32 %v1116_v26, %v1086_v0  ;;  %v851_v28 = vpop.f32.mrb[1].mxu1 }
 0x19e   : > { %v852_v29 = vadd.f32 %v1086_v0, %v851_v28  ;;  %v1117_v34 = vpop.f32.mrb[2].mxu1 }
 0x19f   : > { %872 = vst.msk [vmem:[%s1624_s14 + $0x30] sm:$0xff] %vm690_vm2, %v860_v27  ;;  %v863_v35 = vadd.f32 %v1117_v34, %v1086_v0  ;;  %v854_v36 = vpop.f32.mrb[3].mxu1  ;;  %v901_v41 = vmul.f32 %v860_v27, %v860_v27  ;;  %v885_v47 = vsel %vm690_vm2, %v860_v27, 0.0 }
 0x1a0   : > { %870 = vst.msk [vmem:[%s1624_s14 + $0x20] sm:$0xff] %vm690_vm2, %v852_v29  ;;  %v881_v37 = vsel %vm690_vm2, %v852_v29, 0.0  ;;  %v899_v38 = vmul.f32 %v852_v29, %v852_v29  ;;  %v855_v39 = vadd.f32 %v1086_v0, %v854_v36 }
 0x1a1   : > { %v882_v40 = vadd.f32 %v881_v37, %v880_v23  ;;  %873 = vst.msk [vmem:[%s1624_s14 + $0x38] sm:$0xff] %vm690_vm2, %v863_v35  ;;  %v902_v48 = vmul.f32 %v863_v35, %v863_v35  ;;  %v914_v52 = vsel %vm690_vm2, %v901_v41, 0.0  ;;  %v887_v53 = vsel %vm690_vm2, %v863_v35, 0.0 }
 0x1a2   : > { %v910_v42 = vsel %vm690_vm2, %v899_v38, 0.0  ;;  %871 = vst.msk [vmem:[%s1624_s14 + $0x28] sm:$0xff] %vm690_vm2, %v855_v39  ;;  %v883_v43 = vsel %vm690_vm2, %v855_v39, 0.0  ;;  %v900_v44 = vmul.f32 %v855_v39, %v855_v39 }
 0x1a3   : > { %v911_v45 = vadd.f32 %v910_v42, %v909_v25  ;;  %v884_v46 = vadd.f32 %v883_v43, %v882_v40  ;;  %v916_v30 = vsel %vm690_vm2, %v902_v48, 0.0 }
 0x1a4   : > { %v912_v49 = vsel %vm690_vm2, %v900_v44, 0.0 }
 0x1a5   : > { %v886_v50 = vadd.f32 %v885_v47, %v884_v46  ;;  %v913_v51 = vadd.f32 %v912_v49, %v911_v45 }
 0x1a7   : > { %v888_v54 = vadd.f32 %v887_v53, %v886_v50  ;;  %v915_v55 = vadd.f32 %v914_v52, %v913_v51 }
 0x1a9   : > { %v889_v56 = vrot.slane %v888_v54, 4  ;;  %v917_v31 = vadd.f32 %v916_v30, %v915_v55 }
 0x1ab   : > { %v890_v57 = vadd.f32 %v889_v56, %v888_v54  ;;  %v918_v32 = vrot.slane %v917_v31, 4 }
 0x1ad   : > { %v891_v58 = vrot.slane %v890_v57, 2  ;;  %v919_v59 = vadd.f32 %v918_v32, %v917_v31 }
 0x1af   : > { %v892_v60 = vadd.f32 %v891_v58, %v890_v57  ;;  %v920_v61 = vrot.slane %v919_v59, 2 }
 0x1b1   : > { %v893_v62 = vrot.slane %v892_v60, 1  ;;  %v921_v63 = vadd.f32 %v920_v61, %v919_v59 }
 0x1b3   : > { %v922_v0 = vrot.slane %v921_v63, 1  ;;  %v894_v1 = vadd.f32 %v893_v62, %v892_v60 }
 0x1b5   : > { %v923_v2 = vadd.f32 %v922_v0, %v921_v63 }
 0x1b7   : > { %v925_v3 = vsel %vm924_vm10, %v894_v1, %v923_v2 }
 0x1b8   : > { %927 = vst.msk [vmem:[%s349_s18] sm:$0x3] %vm926_vm11, %v925_v3 }
 0x1b9 PF: > { %s18_s24 = sadd.s32 1, %s1312_s24  }
 0x1ba   : > { %p15_p4 = scmp.ge.s32.totalorder %s18_s24, 4  }
 0x1bc   :  { %17 = sbr.rel (!%p15_p4) target bundleno = 1 (0x1), region = 97 }

// kernel: down_transition_forward.5
= control target key start
LH: loop header
LB: loop body
LE: loop exit
PB: predicated region body
PF: predicated region fallthrough
CT: control target
= control target key end

     0   :  { %s1393_s21 = smov 0   ;;  %s1660_s0 = inlined_call_operand.vmem [shape: f32[2,64,8], index: 0, kind: input, shape index: {}]   ;;  %s1661_s1 = inlined_call_operand.vmem [shape: f32[2,2,8], index: 1, kind: input, shape index: {}]   ;;  %s1662_s2 = inlined_call_operand.vmem [shape: f32[2,8], index: 2, kind: input, shape index: {}]   ;;  %s1663_s3 = inlined_call_operand.vmem [shape: bf16[72,8], index: 3, kind: input, shape index: {}]   ;;  %s1664_s4 = inlined_call_operand.vmem [shape: f32[1,8], index: 4, kind: input, shape index: {}]   ;;  %s1665_s5 = inlined_call_operand.vmem [shape: f32[2,64,8], index: 5, kind: output, shape index: {0}]   ;;  %s1666_s6 = inlined_call_operand.vmem [shape: f32[2,2,8], index: 6, kind: output, shape index: {1}]  }
   0x1 LB: > { %s1070_s22 = sadd.s32 4294967295, %s1347_s21   ;;  %p1074_p0 = scmp.ge.s32.totalorder %s1347_s21, 1  ;;  %s1347_s21 = sphi %s1393_s21, %s17_s21  }
   0x2   : > { %p215_p1 = scmp.lt.s32.totalorder %s1347_s21, 3 }
   0x4   : > { %p216_p2 = pnand %p1074_p0, %p215_p1 }
   0x5   : > { %vm359_vm0 = vcmask (!%p216_p2), 64512   ;;  %vm361_vm1 = vcmask (!%p216_p2), 60416   ;;  %vm266_vm2 = vcmask (!%p216_p2), 58368   ;;  %v1349_v0 = vmov (!%p216_p2), 0.0   ;;  %v264_v1 = vld [vmem:[%s1661_s1] sm:$0x3] (!%p216_p2) }
   0x6   : > { %219 = sbr.rel (%p216_p2) target bundleno = 490 (0x1ea), region = 40  ;;  %360 = vst.msk [vmem:[#allocation2] sm:$0xff] (!%p216_p2), %vm359_vm0, %v1349_v0  ;;  %363 = vst.msk [vmem:[#allocation2 + $0x10] sm:$0xff] (!%p216_p2), %vm359_vm0, %v1349_v0  ;;  %v265_v2 = vld [vmem:[%s1661_s1 + $0x2] sm:$0x3] (!%p216_p2)  ;;  %v267_v3 = vsel (!%p216_p2), %vm266_vm2, %v264_v1, 0.0  ;;  %v295_v24 = vlaneseq (!%p216_p2) }
   0x7   : > { %362 = vst.msk [vmem:[#allocation2 + $0x8] sm:$0xf] (!%p216_p2), %vm361_vm1, %v1349_v0  ;;  %364 = vst.msk [vmem:[#allocation2 + $0x18] sm:$0xf] (!%p216_p2), %vm361_vm1, %v1349_v0  ;;  %v268_v4 = vsel (!%p216_p2), %vm266_vm2, %v265_v2, 0.0  ;;  %s1350_s27 = smov (!%p216_p2), 16  }
   0x8   : > { %365 = vst.msk [vmem:[#allocation2 + $0x20] sm:$0xff] (!%p216_p2), %vm359_vm0, %v1349_v0  ;;  %367 = vst.msk [vmem:[#allocation2 + $0x30] sm:$0xff] (!%p216_p2), %vm359_vm0, %v1349_v0  ;;  %v269_v5 = vadd.f32 (!%p216_p2), %v268_v4, %v267_v3  ;;  %s1351_s28 = smov (!%p216_p2), 8   ;;  %s1352_s29 = smov (!%p216_p2), 48   ;;  %v296_v25 = vshrl.u32 (!%p216_p2), %v295_v24, 7  ;;  %vm854_vm11 = vcmask (!%p216_p2), 1043456  }
   0x9   : > { %366 = vst.msk [vmem:[#allocation2 + $0x28] sm:$0xf] (!%p216_p2), %vm361_vm1, %v1349_v0  ;;  %368 = vst.msk [vmem:[#allocation2 + $0x38] sm:$0xf] (!%p216_p2), %vm361_vm1, %v1349_v0  ;;  %p249_p3 = scmp.lt.s32.totalorder (!%p216_p2), %s1070_s22, 1  ;;  %s1353_s30 = smov (!%p216_p2), 56  }
   0xa   : > { %369 = vst.msk [vmem:[#allocation2 + $0x40] sm:$0xff] (!%p216_p2), %vm359_vm0, %v1349_v0  ;;  %371 = vst.msk [vmem:[#allocation2 + $0x50] sm:$0xff] (!%p216_p2), %vm359_vm0, %v1349_v0  ;;  %v270_v6 = vmul.f32 (!%p216_p2), 0.0078125, %v269_v5  ;;  %v277_v27 = vld [vmem:[%s1662_s2] sm:$0x1] (!%p216_p2)  ;;  %v297_v29 = vsub.s32 (!%p216_p2), 0, %v296_v25 }
   0xb   : > { %370 = vst.msk [vmem:[#allocation2 + $0x48] sm:$0xf] (!%p216_p2), %vm361_vm1, %v1349_v0  ;;  %372 = vst.msk [vmem:[#allocation2 + $0x58] sm:$0xf] (!%p216_p2), %vm361_vm1, %v1349_v0  ;;  %v284_v31 = vld [vmem:[%s1662_s2 + $0x1] sm:$0x1] (!%p216_p2) }
   0xc   : > { %373 = vst.msk [vmem:[#allocation2 + $0x60] sm:$0xff] (!%p216_p2), %vm359_vm0, %v1349_v0  ;;  %375 = vst.msk [vmem:[#allocation2 + $0x70] sm:$0xff] (!%p216_p2), %vm359_vm0, %v1349_v0  ;;  %v271_v7 = vmul.f32 (!%p216_p2), %v270_v6, %v270_v6  ;;  %s1354_s15 = smov (!%p216_p2), 24   ;;  %s1355_s20 = smov (!%p216_p2), 32   ;;  %vm731_vm12 = vcmask (!%p216_p2), 130048   ;;  %vm740_vm13 = vcmask (!%p216_p2), 195584  }
   0xd   : > { %374 = vst.msk [vmem:[#allocation2 + $0x68] sm:$0xf] %vm361_vm1, %v1349_v0  ;;  %376 = vst.msk [vmem:[#allocation2 + $0x78] sm:$0xf] %vm361_vm1, %v1349_v0  ;;  %s1668_s22 = smov (!%p249_p3, %s1070_s22), 1  ;;  %s1356_s25 = smov 40  }
   0xe   : > { %377 = vst.msk [vmem:[#allocation2 + $0x80] sm:$0xff] %vm359_vm0, %v1349_v0  ;;  %379 = vst.msk [vmem:[#allocation2 + $0x90] sm:$0xff] %vm359_vm0, %v1349_v0  ;;  %v410_v8 = vld [vmem:[#allocation2 + $0x4] sm:$0xff]  ;;  %v411_v9 = vld [vmem:[#allocation2 + $0x14] sm:$0xff]  ;;  %v273_v13 = vrot.slane %v271_v7, 7  ;;  %s1100_s7 = sshll.u32 %s1668_s22, 6 }
   0xf   : > { %378 = vst.msk [vmem:[#allocation2 + $0x88] sm:$0xf] %vm361_vm1, %v1349_v0  ;;  %380 = vst.msk [vmem:[#allocation2 + $0x98] sm:$0xf] %vm361_vm1, %v1349_v0  ;;  %v1163_v11 = vpack.i.bf16 %v411_v9, %v410_v8  ;;  %v402_v14 = vld [vmem:[#allocation2 + $0x2] sm:$0xff]  ;;  %v403_v15 = vld [vmem:[#allocation2 + $0x12] sm:$0xff]  ;;  %s253_s12 = scalar_lea.vmem %s1660_s0, %s1100_s7 }
  0x10   : > { %381 = vst.msk [vmem:[#allocation2 + $0xa0] sm:$0xff] %vm359_vm0, %v1349_v0  ;;  %383 = vst.msk [vmem:[#allocation2 + $0xb0] sm:$0xff] %vm359_vm0, %v1349_v0  ;;  %v1158_v17 = vpack.i.bf16 %v403_v15, %v402_v14  ;;  %v275_v18 = vsub.f32 %v270_v6, %v273_v13  ;;  %v287_v32 = vld [vmem:[%s253_s12] sm:$0xff]  ;;  %v288_v33 = vld [vmem:[%s253_s12 + $0x8] sm:$0xff]  ;;  %s1357_s11 = smov 64   ;;  %vm749_vm14 = vcmask 261120  }
  0x11   : > { %382 = vst.msk [vmem:[#allocation2 + $0xa8] sm:$0xf] %vm361_vm1, %v1349_v0  ;;  %384 = vst.msk [vmem:[#allocation2 + $0xb8] sm:$0xf] %vm361_vm1, %v1349_v0  ;;  %1164 = vrot.lane.b32.xlu1 %v1163_v11, %s1350_s27  ;;  %v289_v34 = vld [vmem:[%s253_s12 + $0x10] sm:$0xff]  ;;  %v290_v37 = vld [vmem:[%s253_s12 + $0x18] sm:$0xff] }
  0x12   : > { %1159 = vrot.lane.b32.xlu0 %v1158_v17, %s1351_s28  ;;  %v276_v21 = vmax.f32 %v275_v18, 0.0  ;;  %v291_v38 = vld [vmem:[%s253_s12 + $0x20] sm:$0xff]  ;;  %v292_v39 = vld [vmem:[%s253_s12 + $0x28] sm:$0xff]  ;;  %v293_v40 = vld [vmem:[%s253_s12 + $0x30] sm:$0xff]  ;;  %vm758_vm15 = vcmask 326656   ;;  %vm767_vm1 = vcmask 392192  }
  0x13   : > { %v294_v45 = vld [vmem:[%s253_s12 + $0x38] sm:$0xff]  ;;  %s1618_s12 = scalar_lea.vmem %s1665_s5, %s1100_s7  ;;  %s1079_s7 = sshll.u32 %s1668_s22, 1 }
  0x14   : > { %v278_v23 = vadd.f32 1e-05, %v276_v21 }
  0x16   : > { %1323 = vrsqrt.f32 %v278_v23 }
  0x17   : > { %v449_v10 = vld [vmem:[#allocation2 + $0xa0] sm:$0xff]  ;;  %v450_v12 = vld [vmem:[#allocation2 + $0xb0] sm:$0xff] }
  0x18   : > { %v1168_v16 = vpack.i.bf16 %v450_v12, %v449_v10  ;;  %v457_v19 = vld [vmem:[#allocation2 + $0xa2] sm:$0xff]  ;;  %v458_v20 = vld [vmem:[#allocation2 + $0xb2] sm:$0xff] }
  0x19   : > { %v1173_v22 = vpack.i.bf16 %v458_v20, %v457_v19 }
  0x1a   : > { %1169 = vrot.lane.b32.xlu1 %v1168_v16, %s1352_s29 }
  0x1e   : > { %1174 = vrot.lane.b32.xlu1 %v1173_v22, %s1353_s30 }
  0x20   : > { %v1324_v26 = vpop.eup %1323 }
  0x21   : > { %v281_v28 = vrot.slane %v1324_v26, 1 }
  0x23   : > { %v283_v30 = vmul.f32 %v281_v28, %v277_v27 }
  0x25   : > { %v285_v35 = vmul.f32 %v283_v30, %v270_v6  ;;  %v298_v36 = vrot.slane %v283_v30, %v297_v29 }
  0x27   : > { %v286_v41 = vsub.f32 %v284_v31, %v285_v35  ;;  %v299_v42 = vmul.f32 %v298_v36, %v287_v32  ;;  %v300_v43 = vmul.f32 %v298_v36, %v288_v33  ;;  %v301_v44 = vmul.f32 %v298_v36, %v289_v34 }
  0x28   : > { %v302_v46 = vmul.f32 %v298_v36, %v290_v37  ;;  %v303_v47 = vmul.f32 %v298_v36, %v291_v38  ;;  %v304_v48 = vmul.f32 %v298_v36, %v292_v39  ;;  %v305_v50 = vmul.f32 %v298_v36, %v293_v40 }
  0x29   : > { %v310_v49 = vrot.slane %v286_v41, %v297_v29  ;;  %v306_v51 = vmul.f32 %v298_v36, %v294_v45 }
  0x2b   : > { %v311_v52 = vadd.f32 %v310_v49, %v299_v42  ;;  %v312_v53 = vadd.f32 %v310_v49, %v300_v43  ;;  %v313_v54 = vadd.f32 %v310_v49, %v301_v44  ;;  %v314_v55 = vadd.f32 %v310_v49, %v302_v46  ;;  %v1318_v43 = vld [vmem:[%s1663_s3] sm:$0xff]   ;;  %v1319_v46 = vld [vmem:[%s1663_s3 + $0x8] sm:$0xff]  }
  0x2c   : > { %v315_v56 = vadd.f32 %v310_v49, %v303_v47  ;;  %v316_v57 = vadd.f32 %v310_v49, %v304_v48  ;;  %v317_v60 = vadd.f32 %v310_v49, %v305_v50  ;;  %v318_v63 = vadd.f32 %v310_v49, %v306_v51  ;;  %1111 = vmatprep.subr.bf16.mxu0 %v1318_v43  ;;  %v1320_v50 = vld [vmem:[%s1663_s3 + $0x10] sm:$0xff]  }
  0x2d   : > { %v327_v58 = vmul.f32 1.442695, %v311_v52  ;;  %v329_v59 = vmul.f32 1.442695, %v312_v53  ;;  %v331_v61 = vmul.f32 1.442695, %v313_v54  ;;  %1129 = vmatprep.subr.bf16.mxu1 %v1318_v43  ;;  %1112 = vmatpush3.bf16.msra.mxu0 %v1318_v43 }
  0x2e   : > { %v333_v62 = vmul.f32 1.442695, %v314_v55  ;;  %v335_v0 = vmul.f32 1.442695, %v315_v56  ;;  %v337_v1 = vmul.f32 1.442695, %v316_v57  ;;  %1134 = vmatpush3.bf16.msra.mxu1 %v1318_v43  ;;  %1113 = vmatprep.subr.bf16.mxu0 %v1319_v46 }
  0x2f   : > { %1325 = vpow2.f32 %v327_v58  ;;  %v339_v2 = vmul.f32 1.442695, %v317_v60  ;;  %v341_v3 = vmul.f32 1.442695, %v318_v63  ;;  %vm319_vm3 = vcmp.gt.f32.partialorder %v311_v52, 0.0  ;;  %1130 = vmatprep.subr.bf16.mxu1 %v1319_v46 }
  0x30   : > { %1327 = vpow2.f32 %v329_v59  ;;  %vm320_vm4 = vcmp.gt.f32.partialorder %v312_v53, 0.0  ;;  %vm321_vm5 = vcmp.gt.f32.partialorder %v313_v54, 0.0  ;;  %vm322_vm6 = vcmp.gt.f32.partialorder %v314_v55, 0.0 }
  0x31   : > { %1329 = vpow2.f32 %v331_v61  ;;  %vm323_vm7 = vcmp.gt.f32.partialorder %v315_v56, 0.0  ;;  %vm324_vm8 = vcmp.gt.f32.partialorder %v316_v57, 0.0  ;;  %vm325_vm9 = vcmp.gt.f32.partialorder %v317_v60, 0.0  ;;  %1114 = vmatpush3.bf16.msra.mxu0 %v1319_v46 }
  0x32   : > { %1331 = vpow2.f32 %v333_v62  ;;  %vm326_vm10 = vcmp.gt.f32.partialorder %v318_v63, 0.0  ;;  %1135 = vmatpush3.bf16.msra.mxu1 %v1319_v46  ;;  %1115 = vmatprep.subr.bf16.mxu0 %v1320_v50 }
  0x33   : > { %1333 = vpow2.f32 %v335_v0  ;;  %1131 = vmatprep.subr.bf16.mxu1 %v1320_v50 }
  0x34   : > { %1335 = vpow2.f32 %v337_v1 }
  0x35   : > { %1337 = vpow2.f32 %v339_v2  ;;  %1116 = vmatpush3.bf16.msra.mxu0 %v1320_v50 }
  0x36   : > { %1339 = vpow2.f32 %v341_v3  ;;  %1136 = vmatpush3.bf16.msra.mxu1 %v1320_v50 }
  0x39   : > { %v1326_v4 = vpop.eup %1325 }
  0x3a   : > { %v1328_v5 = vpop.eup %1327  ;;  %v1080_v6 = vadd.f32 -1.0, %v1326_v4 }
  0x3b   : > { %v1330_v7 = vpop.eup %1329  ;;  %v1081_v8 = vadd.f32 -1.0, %v1328_v5 }
  0x3c   : > { %v1332_v9 = vpop.eup %1331  ;;  %v351_v10 = vsel %vm319_vm3, %v311_v52, %v1080_v6  ;;  %v1082_v11 = vadd.f32 -1.0, %v1330_v7  ;;  %v465_v6 = vld [vmem:[#allocation2 + $0xa4] sm:$0xff]  ;;  %v466_v7 = vld [vmem:[#allocation2 + $0xb4] sm:$0xff]  ;;  %vm776_vm3 = vcmask 457728  }
  0x3d   : > { %v1334_v12 = vpop.eup %1333  ;;  %v352_v13 = vsel %vm320_vm4, %v312_v53, %v1081_v8  ;;  %386 = vst.msk [vmem:[#allocation2 + $0x22] sm:$0xff] %vm359_vm0, %v351_v10  ;;  %v1083_v14 = vadd.f32 -1.0, %v1332_v9  ;;  %v1313_v8 = vpack.i.bf16 %v466_v7, %v465_v6  ;;  %vm785_vm4 = vcmask 523264  }
  0x3e   : > { %v1336_v15 = vpop.eup %1335  ;;  %387 = vst.msk [vmem:[#allocation2 + $0x32] sm:$0xff] %vm359_vm0, %v352_v13  ;;  %v353_v16 = vsel %vm321_vm5, %v313_v54, %v1082_v11  ;;  %v1084_v17 = vadd.f32 -1.0, %v1334_v12  ;;  %v1321_v54 = vld [vmem:[%s1663_s3 + $0x18] sm:$0xff]   ;;  %vm841_vm5 = vcmask 588800  }
  0x3f   : > { %v1338_v18 = vpop.eup %1337  ;;  %v354_v19 = vsel %vm322_vm6, %v314_v55, %v1083_v14  ;;  %388 = vst.msk [vmem:[#allocation2 + $0x42] sm:$0xff] %vm359_vm0, %v353_v16  ;;  %v1085_v20 = vadd.f32 -1.0, %v1336_v15  ;;  %1117 = vmatprep.subr.bf16.mxu0 %v1321_v54  ;;  %1132 = vmatprep.subr.bf16.mxu1 %v1321_v54  ;;  %vm981_vm6 = vcmask 1040384  }
  0x40   : > { %v1340_v21 = vpop.eup %1339  ;;  %389 = vst.msk [vmem:[#allocation2 + $0x52] sm:$0xff] %vm359_vm0, %v354_v19  ;;  %v355_v22 = vsel %vm323_vm7, %v315_v56, %v1084_v17  ;;  %v1086_v23 = vadd.f32 -1.0, %v1338_v18  ;;  %v1322_v56 = vld [vmem:[%s1663_s3 + $0x20] ss:$0 sps:$4 sm:$0xff]   ;;  %1118 = vmatpush3.bf16.msra.mxu0 %v1321_v54  ;;  %1137 = vmatpush3.bf16.msra.mxu1 %v1321_v54 }
  0x41   : > { %v356_v24 = vsel %vm324_vm8, %v316_v57, %v1085_v20  ;;  %390 = vst.msk [vmem:[#allocation2 + $0x62] sm:$0xff] %vm359_vm0, %v355_v22  ;;  %v1087_v25 = vadd.f32 -1.0, %v1340_v21  ;;  %v856_v57 = vsel %vm854_vm11, %v1322_v56, 0  ;;  %1139 = vmatprep.subr.msk.bf16.mxu0 %vm854_vm11, %v1322_v56  ;;  %1140 = vmatprep.subr.msk.bf16.mxu1 %vm854_vm11, %v1322_v56  ;;  %v395_v21 = vld [vmem:[#allocation2 + $0x10] sm:$0xff]  ;;  %v394_v22 = vld [vmem:[#allocation2] sm:$0xff] }
  0x42   : > { %391 = vst.msk [vmem:[#allocation2 + $0x72] sm:$0xff] %vm359_vm0, %v356_v24  ;;  %v357_v26 = vsel %vm325_vm9, %v317_v60, %v1086_v23 }
  0x43   : > { %v358_v27 = vsel %vm326_vm10, %v318_v63, %v1087_v25  ;;  %392 = vst.msk [vmem:[#allocation2 + $0x82] sm:$0xff] %vm359_vm0, %v357_v26 }
  0x44   : > { %v412_v28 = vld [vmem:[#allocation2 + $0x24] sm:$0xff]  ;;  %393 = vst.msk [vmem:[#allocation2 + $0x92] sm:$0xff] %vm359_vm0, %v358_v27  ;;  %1120 = vmatpush3.bf16.msra.mxu0 %v856_v57  ;;  %1138 = vmatpush3.bf16.msra.mxu1 %v856_v57 }
  0x45   : > { %v404_v29 = vld [vmem:[#allocation2 + $0x22] sm:$0xff]  ;;  %v413_v31 = vld [vmem:[#allocation2 + $0x34] sm:$0xff] }
  0x46   : > { %v1462_v30 = vld [vmem:[#allocation2 + $0x20] sm:$0xff]  ;;  %v405_v32 = vld [vmem:[#allocation2 + $0x32] sm:$0xff]  ;;  %v1183_v34 = vpack.i.bf16 %v413_v31, %v412_v28 }
  0x47   : > { %v1465_v33 = vld [vmem:[#allocation2 + $0x30] sm:$0xff]  ;;  %v1178_v35 = vpack.i.bf16 %v405_v32, %v404_v29  ;;  %v1467_v36 = vld [vmem:[#allocation2 + $0x40] sm:$0xff] }
  0x48   : > { %v1469_v37 = vld [vmem:[#allocation2 + $0x50] sm:$0xff]  ;;  %1184 = vrot.lane.b32.xlu1 %v1183_v34, %s1350_s27  ;;  %v1188_v39 = vpack.i.bf16 %v1465_v33, %v1462_v30  ;;  %v428_v40 = vld [vmem:[#allocation2 + $0x42] sm:$0xff] }
  0x49   : > { %1179 = vrot.lane.b32.xlu0 %v1178_v35, %s1351_s28  ;;  %v1193_v38 = vpack.i.bf16 %v1469_v37, %v1467_v36  ;;  %v429_v41 = vld [vmem:[#allocation2 + $0x52] sm:$0xff]  ;;  %v436_v44 = vld [vmem:[#allocation2 + $0x44] sm:$0xff] }
  0x4a   : > { %v1203_v42 = vpack.i.bf16 %v429_v41, %v428_v40  ;;  %v437_v45 = vld [vmem:[#allocation2 + $0x54] sm:$0xff]  ;;  %v1487_v48 = vld [vmem:[#allocation2 + $0x60] sm:$0xff] }
  0x4b   : > { %v1213_v47 = vpack.i.bf16 %v437_v45, %v436_v44  ;;  %v1489_v49 = vld [vmem:[#allocation2 + $0x70] sm:$0xff]  ;;  %v453_v52 = vld [vmem:[#allocation2 + $0x62] sm:$0xff] }
  0x4c   : > { %1194 = vrot.lane.b32.xlu1 %v1193_v38, %s1354_s15  ;;  %v1223_v51 = vpack.i.bf16 %v1489_v49, %v1487_v48  ;;  %v454_v53 = vld [vmem:[#allocation2 + $0x72] sm:$0xff]  ;;  %v461_v58 = vld [vmem:[#allocation2 + $0x64] sm:$0xff] }
  0x4d   : > { %1189 = vrot.lane.b32.xlu0 %v1188_v39, %s1354_s15  ;;  %v1233_v55 = vpack.i.bf16 %v454_v53, %v453_v52  ;;  %v462_v59 = vld [vmem:[#allocation2 + $0x74] sm:$0xff]  ;;  %v424_v61 = vld [vmem:[#allocation2 + $0x80] sm:$0xff] }
  0x4e   : > { %v1248_v60 = vpack.i.bf16 %v462_v59, %v461_v58  ;;  %v425_v62 = vld [vmem:[#allocation2 + $0x90] sm:$0xff]  ;;  %v432_v0 = vld [vmem:[#allocation2 + $0x82] sm:$0xff] }
  0x4f   : > { %v1273_v63 = vpack.i.bf16 %v425_v62, %v424_v61  ;;  %v433_v1 = vld [vmem:[#allocation2 + $0x92] sm:$0xff]  ;;  %v440_v3 = vld [vmem:[#allocation2 + $0x84] sm:$0xff] }
  0x50   : > { %1204 = vrot.lane.b32.xlu1 %v1203_v42, %s1355_s20  ;;  %v1283_v2 = vpack.i.bf16 %v433_v1, %v432_v0  ;;  %v441_v4 = vld [vmem:[#allocation2 + $0x94] sm:$0xff] }
  0x51   : > { %1199 = vrot.lane.b32.xlu0 %v1178_v35, %s1355_s20  ;;  %v1293_v5 = vpack.i.bf16 %v441_v4, %v440_v3 }
  0x54   : > { %1214 = vrot.lane.b32.xlu1 %v1213_v47, %s1356_s25 }
  0x55   : > { %1209 = vrot.lane.b32.xlu0 %v1183_v34, %s1356_s25 }
  0x58   : > { %1224 = vrot.lane.b32.xlu1 %v1223_v51, %s1352_s29 }
  0x59   : > { %1219 = vrot.lane.b32.xlu0 %v1193_v38, %s1352_s29 }
  0x5c   : > { %1234 = vrot.lane.b32.xlu1 %v1233_v55, %s1353_s30 }
  0x5d   : > { %1229 = vrot.lane.b32.xlu0 %v1203_v42, %s1353_s30 }
  0x60   : > { %1244 = vrot.lane.b32.xlu1 %v1203_v42, %s1351_s28 }
  0x61   : > { %1239 = vrot.lane.b32.xlu0 %v1213_v47, %s1357_s11 }
  0x64   : > { %1254 = vrot.lane.b32.xlu1 %v1233_v55, %s1351_s28 }
  0x65   : > { %1249 = vrot.lane.b32.xlu0 %v1248_v60, %s1357_s11 }
  0x68   : > { %1264 = vrot.lane.b32.xlu1 %v1248_v60, %s1350_s27 }
  0x69   : > { %1259 = vrot.lane.b32.xlu0 %v1213_v47, %s1350_s27 }
  0x6c   : > { %1274 = vrot.lane.b32.xlu1 %v1273_v63, %s1354_s15 }
  0x6d   : > { %1269 = vrot.lane.b32.xlu0 %v1223_v51, %s1354_s15  ;;  %s262_s15 = scalar_lea.vmem %s1666_s6, %s1079_s7 }
  0x70   : > { %1284 = vrot.lane.b32.xlu1 %v1283_v2, %s1355_s20 }
  0x71   : > { %1279 = vrot.lane.b32.xlu0 %v1233_v55, %s1355_s20 }
  0x74   : > { %1294 = vrot.lane.b32.xlu1 %v1293_v5, %s1356_s25 }
  0x75   : > { %1289 = vrot.lane.b32.xlu0 %v1248_v60, %s1356_s25 }
  0x78   : > { %1314 = vrot.lane.b32.xlu1 %v1313_v8, %s1357_s11 }
  0x79   : > { %1299 = vrot.lane.b32.xlu0 %v1273_v63, %s1352_s29 }
  0x7d   : > { %1304 = vrot.lane.b32.xlu0 %v1283_v2, %s1353_s30 }
  0x81   : > { %1309 = vrot.lane.b32.xlu0 %v1293_v5, %s1357_s11 }
  0x83   : > { %v1165_v9 = vpop.permute.xlu1 %1164 }
  0x84   : > { %v1160_v12 = vpop.permute.xlu0 %1159  ;;  %v1167_v27 = vunpack.i.h.bf16 %v1165_v9  ;;  %v1166_v28 = vunpack.i.l.bf16 %v1165_v9 }
  0x85   : > { %v1162_v19 = vunpack.i.h.bf16 %v1160_v12  ;;  %v1161_v20 = vunpack.i.l.bf16 %v1160_v12 }
  0x87   : > { %v724_v29 = vsel %vm359_vm0, %v395_v21, %v1162_v19  ;;  %v723_v31 = vsel %vm359_vm0, %v394_v22, %v1161_v20 }
  0x88   : > { %v732_v45 = vsel %vm731_vm12, %v723_v31, %v1166_v28  ;;  %v733_v46 = vsel %vm731_vm12, %v724_v29, %v1167_v27 }
  0x8c   : > { %v1520_v10 = vpop.permute.xlu1 %1169 }
  0x90   : > { %v1522_v11 = vpop.permute.xlu1 %1174 }
  0xba   : > { %v1185_v13 = vpop.permute.xlu1 %1184 }
  0xbb   : > { %v1180_v14 = vpop.permute.xlu0 %1179  ;;  %v1187_v32 = vunpack.i.h.bf16 %v1185_v13  ;;  %v1186_v34 = vunpack.i.l.bf16 %v1185_v13 }
  0xbc   : > { %v1182_v23 = vunpack.i.h.bf16 %v1180_v14  ;;  %v1181_v24 = vunpack.i.l.bf16 %v1180_v14 }
  0xbe   : > { %v1195_v15 = vpop.permute.xlu1 %1194  ;;  %v726_v35 = vsel %vm359_vm0, %v1465_v33, %v1182_v23  ;;  %v725_v38 = vsel %vm359_vm0, %v1462_v30, %v1181_v24 }
  0xbf   : > { %v1190_v16 = vpop.permute.xlu0 %1189  ;;  %v1197_v39 = vunpack.i.h.bf16 %v1195_v15  ;;  %v1196_v40 = vunpack.i.l.bf16 %v1195_v15  ;;  %v734_v47 = vsel %vm731_vm12, %v725_v38, %v1186_v34  ;;  %v735_v33 = vsel %vm731_vm12, %v726_v35, %v1187_v32 }
  0xc0   : > { %v1192_v43 = vunpack.i.h.bf16 %v1190_v16  ;;  %v1191_v44 = vunpack.i.l.bf16 %v1190_v16 }
  0xc1   : > { %v743_v51 = vsel %vm740_vm13, %v734_v47, %v1196_v40  ;;  %v744_v52 = vsel %vm740_vm13, %v735_v33, %v1197_v39 }
  0xc2   : > { %v1524_v17 = vpop.permute.xlu1 %1204  ;;  %v742_v57 = vsel %vm740_vm13, %v733_v46, %v1192_v43  ;;  %v741_v58 = vsel %vm740_vm13, %v732_v45, %v1191_v44 }
  0xc3   : > { %v1200_v18 = vpop.permute.xlu0 %1199  ;;  %v1207_v61 = vunpack.i.h.bf16 %v1524_v17  ;;  %v1206_v62 = vunpack.i.l.bf16 %v1524_v17 }
  0xc4   : > { %v1202_v50 = vunpack.i.h.bf16 %v1200_v18  ;;  %v1201_v30 = vunpack.i.l.bf16 %v1200_v18 }
  0xc5   : > { %v752_v21 = vsel %vm749_vm14, %v743_v51, %v1206_v62  ;;  %v753_v22 = vsel %vm749_vm14, %v744_v52, %v1207_v61 }
  0xc6   : > { %v1526_v25 = vpop.permute.xlu1 %1214  ;;  %v750_v1 = vsel %vm749_vm14, %v741_v58, %v1201_v30  ;;  %v751_v2 = vsel %vm749_vm14, %v742_v57, %v1202_v50 }
  0xc7   : > { %v1210_v26 = vpop.permute.xlu0 %1209  ;;  %v1217_v3 = vunpack.i.h.bf16 %v1526_v25  ;;  %v1216_v4 = vunpack.i.l.bf16 %v1526_v25 }
  0xc8   : > { %v1212_v53 = vunpack.i.h.bf16 %v1210_v26  ;;  %v1211_v54 = vunpack.i.l.bf16 %v1210_v26 }
  0xc9   : > { %v761_v25 = vsel %vm758_vm15, %v752_v21, %v1216_v4  ;;  %v762_v26 = vsel %vm758_vm15, %v753_v22, %v1217_v3 }
  0xca   : > { %v1225_v41 = vpop.permute.xlu1 %1224  ;;  %v759_v5 = vsel %vm758_vm15, %v750_v1, %v1211_v54  ;;  %v760_v6 = vsel %vm758_vm15, %v751_v2, %v1212_v53 }
  0xcb   : > { %v1220_v42 = vpop.permute.xlu0 %1219  ;;  %v1227_v7 = vunpack.i.h.bf16 %v1225_v41  ;;  %v1226_v8 = vunpack.i.l.bf16 %v1225_v41 }
  0xcc   : > { %v1222_v59 = vunpack.i.h.bf16 %v1220_v42  ;;  %v1221_v60 = vunpack.i.l.bf16 %v1220_v42 }
  0xcd   : > { %v770_v31 = vsel %vm767_vm1, %v761_v25, %v1226_v8  ;;  %v771_v32 = vsel %vm767_vm1, %v762_v26, %v1227_v7 }
  0xce   : > { %v1235_v55 = vpop.permute.xlu1 %1234  ;;  %v768_v13 = vsel %vm767_vm1, %v759_v5, %v1221_v60  ;;  %v769_v14 = vsel %vm767_vm1, %v760_v6, %v1222_v59 }
  0xcf   : > { %v1230_v56 = vpop.permute.xlu0 %1229  ;;  %v1237_v17 = vunpack.i.h.bf16 %v1235_v55  ;;  %v1236_v18 = vunpack.i.l.bf16 %v1235_v55 }
  0xd0   : > { %v1232_v63 = vunpack.i.h.bf16 %v1230_v56  ;;  %v1231_v0 = vunpack.i.l.bf16 %v1230_v56 }
  0xd1   : > { %v779_v38 = vsel %vm776_vm3, %v770_v31, %v1236_v18  ;;  %v780_v39 = vsel %vm776_vm3, %v771_v32, %v1237_v17  ;;  %v1171_v17 = vunpack.i.l.bf16 %v1520_v10  ;;  %v1176_v18 = vunpack.i.l.bf16 %v1522_v11 }
  0xd2   : > { %v1245_v9 = vpop.permute.xlu1 %1244  ;;  %v777_v19 = vsel %vm776_vm3, %v768_v13, %v1231_v0  ;;  %v778_v20 = vsel %vm776_vm3, %v769_v14, %v1232_v63 }
  0xd3   : > { %v1240_v12 = vpop.permute.xlu0 %1239  ;;  %v1247_v59 = vunpack.i.h.bf16 %v1245_v9  ;;  %v1246_v60 = vunpack.i.l.bf16 %v1245_v9 }
  0xd4   : > { %v1242_v15 = vunpack.i.h.bf16 %v1240_v12  ;;  %v1241_v16 = vunpack.i.l.bf16 %v1240_v12 }
  0xd5   : > { %v728_v5 = vsel %vm359_vm0, %v1469_v37, %v1247_v59  ;;  %v727_v6 = vsel %vm359_vm0, %v1467_v36, %v1246_v60  ;;  %v1177_v37 = vunpack.i.h.bf16 %v1522_v11 }
  0xd6   : > { %v786_v23 = vsel %vm785_vm4, %v777_v19, %v1241_v16  ;;  %v787_v24 = vsel %vm785_vm4, %v778_v20, %v1242_v15  ;;  %v1255_v27 = vpop.permute.xlu1 %1254  ;;  %v1172_v16 = vunpack.i.h.bf16 %v1520_v10 }
  0xd7   : > { %v1250_v28 = vpop.permute.xlu0 %1249  ;;  %v794_v29 = vpack.c.bf16 %v787_v24, %v786_v23  ;;  %v1257_v45 = vunpack.i.h.bf16 %v1255_v27  ;;  %v1256_v46 = vunpack.i.l.bf16 %v1255_v27 }
  0xd8   : > { %v1252_v34 = vunpack.i.h.bf16 %v1250_v28  ;;  %v1251_v35 = vunpack.i.l.bf16 %v1250_v28 }
  0xd9   : > { %1121 = vmatprep.mubr.msk.bf16.mxu0 %vm841_vm5, %v794_v29  ;;  %v730_v51 = vsel %vm359_vm0, %v1489_v49, %v1257_v45  ;;  %v729_v52 = vsel %vm359_vm0, %v1487_v48, %v1256_v46 }
  0xda   : > { %v788_v40 = vsel %vm785_vm4, %v779_v38, %v1251_v35  ;;  %v789_v41 = vsel %vm785_vm4, %v780_v39, %v1252_v34  ;;  %v1265_v43 = vpop.permute.xlu1 %1264 }
  0xdb   : > { %v795_v42 = vpack.c.bf16 %v789_v41, %v788_v40  ;;  %v1260_v44 = vpop.permute.xlu0 %1259  ;;  %v1267_v50 = vunpack.i.h.bf16 %v1265_v43  ;;  %v1266_v30 = vunpack.i.l.bf16 %v1265_v43 }
  0xdc   : > { %v1262_v3 = vunpack.i.h.bf16 %v1260_v44  ;;  %v1261_v4 = vunpack.i.l.bf16 %v1260_v44 }
  0xdd   : > { %1122 = vmatmul.mubr.msk.bf16.vlgmr.msra.gmra.mrb[0].mxu0 %vm841_vm5, %v795_v42  ;;  %v738_v57 = vsel %vm731_vm12, %v729_v52, %v1266_v30  ;;  %v739_v58 = vsel %vm731_vm12, %v730_v51, %v1267_v50 }
  0xde   : > { %v1275_v47 = vpop.permute.xlu1 %1274  ;;  %v737_v36 = vsel %vm731_vm12, %v728_v5, %v1262_v3  ;;  %v736_v19 = vsel %vm731_vm12, %v727_v6, %v1261_v4 }
  0xdf   : > { %v1270_v33 = vpop.permute.xlu0 %1269  ;;  %v1277_v55 = vunpack.i.h.bf16 %v1275_v47  ;;  %v1276_v56 = vunpack.i.l.bf16 %v1275_v47 }
  0xe0   : > { %v1272_v12 = vunpack.i.h.bf16 %v1270_v33  ;;  %v1271_v13 = vunpack.i.l.bf16 %v1270_v33 }
  0xe1   : > { %v747_v1 = vsel %vm740_vm13, %v738_v57, %v1276_v56  ;;  %v748_v49 = vsel %vm740_vm13, %v739_v58, %v1277_v55  ;;  %v1088_v57 = vld [vmem:[%s1664_s4] ss:$0 sm:$0xff] }
  0xe2   : > { %v1285_v53 = vpop.permute.xlu1 %1284  ;;  %v745_v10 = vsel %vm740_vm13, %v736_v19, %v1271_v13  ;;  %v746_v28 = vsel %vm740_vm13, %v737_v36, %v1272_v12 }
  0xe3   : > { %v1280_v54 = vpop.permute.xlu0 %1279  ;;  %v1287_v61 = vunpack.i.h.bf16 %v1285_v53  ;;  %v1286_v62 = vunpack.i.l.bf16 %v1285_v53 }
  0xe4   : > { %v1282_v20 = vunpack.i.h.bf16 %v1280_v54  ;;  %v1281_v21 = vunpack.i.l.bf16 %v1280_v54 }
  0xe5   : > { %v756_v7 = vsel %vm749_vm14, %v747_v1, %v1286_v62  ;;  %v757_v8 = vsel %vm749_vm14, %v748_v49, %v1287_v61 }
  0xe6   : > { %v1295_v63 = vpop.permute.xlu1 %1294  ;;  %v754_v38 = vsel %vm749_vm14, %v745_v10, %v1281_v21  ;;  %v755_v39 = vsel %vm749_vm14, %v746_v28, %v1282_v20 }
  0xe7   : > { %v1290_v0 = vpop.permute.xlu0 %1289  ;;  %v1297_v2 = vunpack.i.h.bf16 %v1295_v63  ;;  %v1296_v48 = vunpack.i.l.bf16 %v1295_v63 }
  0xe8   : > { %v1292_v25 = vunpack.i.h.bf16 %v1290_v0  ;;  %v1291_v26 = vunpack.i.l.bf16 %v1290_v0 }
  0xe9   : > { %v765_v14 = vsel %vm758_vm15, %v756_v7, %v1296_v48  ;;  %v766_v15 = vsel %vm758_vm15, %v757_v8, %v1297_v2 }
  0xea   : > { %v1315_v22 = vpop.permute.xlu1 %1314  ;;  %v774_v23 = vsel %vm767_vm1, %v765_v14, %v1171_v17  ;;  %v775_v24 = vsel %vm767_vm1, %v766_v15, %v1172_v16  ;;  %v763_v42 = vsel %vm758_vm15, %v754_v38, %v1291_v26  ;;  %v764_v43 = vsel %vm758_vm15, %v755_v39, %v1292_v25 }
  0xeb   : > { %v1300_v9 = vpop.permute.xlu0 %1299  ;;  %v1317_v31 = vunpack.i.h.bf16 %v1315_v22  ;;  %v1316_v32 = vunpack.i.l.bf16 %v1315_v22  ;;  %v783_v40 = vsel %vm776_vm3, %v774_v23, %v1176_v18  ;;  %v784_v41 = vsel %vm776_vm3, %v775_v24, %v1177_v37 }
  0xec   : > { %v1302_v29 = vunpack.i.h.bf16 %v1300_v9  ;;  %v1301_v11 = vunpack.i.l.bf16 %v1300_v9 }
  0xed   : > { %v792_v50 = vsel %vm785_vm4, %v783_v40, %v1316_v32  ;;  %v793_v30 = vsel %vm785_vm4, %v784_v41, %v1317_v31 }
  0xee   : > { %v772_v45 = vsel %vm767_vm1, %v763_v42, %v1301_v11  ;;  %v773_v46 = vsel %vm767_vm1, %v764_v43, %v1302_v29  ;;  %v797_v56 = vpack.c.bf16 %v793_v30, %v792_v50 }
  0xef   : > { %v1305_v27 = vpop.permute.xlu0 %1304 }
  0xf0   : > { %v1307_v34 = vunpack.i.h.bf16 %v1305_v27  ;;  %v1306_v35 = vunpack.i.l.bf16 %v1305_v27 }
  0xf2   : > { %v781_v51 = vsel %vm776_vm3, %v772_v45, %v1306_v35  ;;  %v782_v52 = vsel %vm776_vm3, %v773_v46, %v1307_v34 }
  0xf3   : > { %v1310_v44 = vpop.permute.xlu0 %1309 }
  0xf4   : > { %v1312_v47 = vunpack.i.h.bf16 %v1310_v44  ;;  %v1311_v33 = vunpack.i.l.bf16 %v1310_v44 }
  0xf6   : > { %v790_v53 = vsel %vm785_vm4, %v781_v51, %v1311_v33  ;;  %v791_v54 = vsel %vm785_vm4, %v782_v52, %v1312_v47 }
  0xf7   : > { %v796_v55 = vpack.c.bf16 %v791_v54, %v790_v53 }
  0xf9   : > { %1125 = vmatprep.mubr.msk.bf16.mxu1 %vm841_vm5, %v796_v55 }
  0xfa   : > { %1126 = vmatmul.mubr.msk.bf16.vlgmr.msra.gmra.mrb[0].mxu1 %vm841_vm5, %v797_v56 }
 0x1b0   : > { %v1123_v58 = vpop.f32.mrb[0].mxu0 }
 0x1b1   : > { %v901_v59 = vadd.f32 %v1123_v58, %v1088_v57  ;;  %v892_v60 = vpop.f32.mrb[1].mxu0 }
 0x1b2   : > { %v893_v61 = vadd.f32 %v1088_v57, %v892_v60  ;;  %v1124_v62 = vpop.f32.mrb[2].mxu0 }
 0x1b3   : > { %925 = vst.msk [vmem:[%s1618_s12 + $0x10] sm:$0xff] %vm359_vm0, %v901_v59  ;;  %v904_v63 = vadd.f32 %v1124_v62, %v1088_v57  ;;  %v895_v0 = vpop.f32.mrb[3].mxu0  ;;  %v954_v2 = vmul.f32 %v901_v59, %v901_v59  ;;  %v934_v6 = vsel %vm359_vm0, %v901_v59, 0.0 }
 0x1b4   : > { %923 = vst.msk [vmem:[%s1618_s12] sm:$0xff] %vm359_vm0, %v893_v61  ;;  %v952_v1 = vmul.f32 %v893_v61, %v893_v61  ;;  %v896_v49 = vadd.f32 %v1088_v57, %v895_v0  ;;  %v931_v48 = vsel %vm359_vm0, %v893_v61, 0.0 }
 0x1b5   : > { %926 = vst.msk [vmem:[%s1618_s12 + $0x18] sm:$0xff] %vm359_vm0, %v904_v63  ;;  %v955_v8 = vmul.f32 %v904_v63, %v904_v63  ;;  %v963_v14 = vsel %vm359_vm0, %v954_v2, 0.0  ;;  %v936_v15 = vsel %vm359_vm0, %v904_v63, 0.0 }
 0x1b6   : > { %924 = vst.msk [vmem:[%s1618_s12 + $0x8] sm:$0xff] %vm359_vm0, %v896_v49  ;;  %v932_v3 = vsel %vm359_vm0, %v896_v49, 0.0  ;;  %v953_v4 = vmul.f32 %v896_v49, %v896_v49  ;;  %v960_v7 = vsel %vm359_vm0, %v952_v1, 0.0 }
 0x1b7   : > { %v933_v5 = vadd.f32 %v932_v3, %v931_v48  ;;  %v965_v37 = vsel %vm359_vm0, %v955_v8, 0.0 }
 0x1b8   : > { %v961_v9 = vsel %vm359_vm0, %v953_v4, 0.0 }
 0x1b9   : > { %v935_v12 = vadd.f32 %v934_v6, %v933_v5  ;;  %v962_v13 = vadd.f32 %v961_v9, %v960_v7 }
 0x1bb   : > { %v964_v16 = vadd.f32 %v963_v14, %v962_v13  ;;  %v937_v17 = vadd.f32 %v936_v15, %v935_v12 }
 0x1bd   : > { %v966_v18 = vadd.f32 %v965_v37, %v964_v16 }
 0x1cd   : > { %v1127_v36 = vpop.f32.mrb[0].mxu1 }
 0x1ce   : > { %v917_v19 = vadd.f32 %v1127_v36, %v1088_v57  ;;  %v908_v20 = vpop.f32.mrb[1].mxu1 }
 0x1cf   : > { %v909_v21 = vadd.f32 %v1088_v57, %v908_v20  ;;  %v1128_v22 = vpop.f32.mrb[2].mxu1 }
 0x1d0   : > { %929 = vst.msk [vmem:[%s1618_s12 + $0x30] sm:$0xff] %vm359_vm0, %v917_v19  ;;  %v920_v23 = vadd.f32 %v1128_v22, %v1088_v57  ;;  %v911_v24 = vpop.f32.mrb[3].mxu1  ;;  %v958_v28 = vmul.f32 %v917_v19, %v917_v19  ;;  %v942_v35 = vsel %vm359_vm0, %v917_v19, 0.0 }
 0x1d1   : > { %927 = vst.msk [vmem:[%s1618_s12 + $0x20] sm:$0xff] %vm359_vm0, %v909_v21  ;;  %v938_v25 = vsel %vm359_vm0, %v909_v21, 0.0  ;;  %v956_v26 = vmul.f32 %v909_v21, %v909_v21  ;;  %v912_v27 = vadd.f32 %v1088_v57, %v911_v24 }
 0x1d2   : > { %v939_v10 = vadd.f32 %v938_v25, %v937_v17  ;;  %930 = vst.msk [vmem:[%s1618_s12 + $0x38] sm:$0xff] %vm359_vm0, %v920_v23  ;;  %v959_v38 = vmul.f32 %v920_v23, %v920_v23  ;;  %v971_v42 = vsel %vm359_vm0, %v958_v28, 0.0  ;;  %v944_v43 = vsel %vm359_vm0, %v920_v23, 0.0 }
 0x1d3   : > { %v967_v29 = vsel %vm359_vm0, %v956_v26, 0.0  ;;  %928 = vst.msk [vmem:[%s1618_s12 + $0x28] sm:$0xff] %vm359_vm0, %v912_v27  ;;  %v940_v11 = vsel %vm359_vm0, %v912_v27, 0.0  ;;  %v957_v31 = vmul.f32 %v912_v27, %v912_v27 }
 0x1d4   : > { %v968_v32 = vadd.f32 %v967_v29, %v966_v18  ;;  %v941_v34 = vadd.f32 %v940_v11, %v939_v10  ;;  %v973_v46 = vsel %vm359_vm0, %v959_v38, 0.0 }
 0x1d5   : > { %v969_v39 = vsel %vm359_vm0, %v957_v31, 0.0 }
 0x1d6   : > { %v943_v40 = vadd.f32 %v942_v35, %v941_v34  ;;  %v970_v41 = vadd.f32 %v969_v39, %v968_v32 }
 0x1d8   : > { %v945_v44 = vadd.f32 %v944_v43, %v943_v40  ;;  %v972_v45 = vadd.f32 %v971_v42, %v970_v41 }
 0x1da   : > { %v946_v47 = vrot.slane %v945_v44, 4  ;;  %v974_v33 = vadd.f32 %v973_v46, %v972_v45 }
 0x1dc   : > { %v947_v50 = vadd.f32 %v946_v47, %v945_v44  ;;  %v975_v30 = vrot.slane %v974_v33, 4 }
 0x1de   : > { %v948_v51 = vrot.slane %v947_v50, 2  ;;  %v976_v52 = vadd.f32 %v975_v30, %v974_v33 }
 0x1e0   : > { %v949_v53 = vadd.f32 %v948_v51, %v947_v50  ;;  %v977_v54 = vrot.slane %v976_v52, 2 }
 0x1e2   : > { %v950_v55 = vrot.slane %v949_v53, 1  ;;  %v978_v56 = vadd.f32 %v977_v54, %v976_v52 }
 0x1e4   : > { %v979_v57 = vrot.slane %v978_v56, 1  ;;  %v951_v58 = vadd.f32 %v950_v55, %v949_v53 }
 0x1e6   : > { %v980_v59 = vadd.f32 %v979_v57, %v978_v56 }
 0x1e8   : > { %v982_v60 = vsel %vm981_vm6, %v951_v58, %v980_v59 }
 0x1e9   : > { %983 = vst.msk [vmem:[%s262_s15] sm:$0x3] %vm266_vm2, %v982_v60 }
 0x1ea PF: > { %s17_s21 = sadd.s32 1, %s1347_s21  }
 0x1eb   : > { %p14_p4 = scmp.ge.s32.totalorder %s17_s21, 4  }
 0x1ed   :  { %16 = sbr.rel (!%p14_p4) target bundleno = 1 (0x1), region = 84 }

</bundles_post_ra>
